<compile_context>
chip_gen: v7x
topology: tpu7x:2x2x1
jax: 0.10.0
libtpu: 0.0.40
codegen_flags: <defaults>
</compile_context>

<pallas_src>
import functools

import jax
import jax.numpy as jnp
from jax.experimental import pallas as pl
from jax.experimental.pallas import tpu as pltpu


def _cbam_kernel(x_ref, w1t_ref, w2t_ref, wmask_ref, out_ref, *, W, K, inv_hw):
    # x_ref:     (Nb, C, HWp)       input block (caller dtype), HWp lane-dense
    # w1t_ref:   (C, mid)           fc1 weight transposed
    # w2t_ref:   (mid, C)           fc2 weight transposed
    # wmask_ref: (K*K, 2*Nb, HWp)   conv weight * SAME-padding validity per tap,
    #                               pre-expanded to the stacked [max rows | avg rows]
    # out_ref:   (Nb, C, HWp)
    Nb, C, HWp = x_ref.shape
    pad = K // 2

    xs = x_ref[...].astype(jnp.float32)                          # (Nb, C, HWp)

    # ---- channel attention: global avg-pool -> fc1 -> ReLU -> fc2 -> sigmoid
    pooled = jnp.sum(xs, axis=2) * inv_hw                        # (Nb, C), true-HW mean
    h = jnp.maximum(
        jnp.dot(pooled, w1t_ref[...], preferred_element_type=jnp.float32), 0.0)
    att = jax.nn.sigmoid(
        jnp.dot(h, w2t_ref[...], preferred_element_type=jnp.float32))  # (Nb, C)

    # channel-attended tensor goes straight into out_ref (out_ref is the ca buffer)
    out_ref[...] = (xs * att[:, :, None]).astype(out_ref.dtype)

    # ---- channel-wise max / mean maps, stacked along the sublane axis
    ca = out_ref[...].astype(jnp.float32)                        # (Nb, C, HWp)
    maxp = jnp.max(ca, axis=1)                                   # (Nb, HWp)
    avgp = jnp.mean(ca, axis=1)                                  # (Nb, HWp)
    stacked = jnp.concatenate([maxp, avgp], axis=0)              # (2*Nb, HWp)

    # ---- KxK SAME conv: one lane roll per tap on the stacked maps.
    # wmask_ref[t] already folds the conv weight with the zero-padding validity
    # mask (and is zero in HW-pad lanes), so lane-wrap / out-of-image taps are 0.
    acc0 = jnp.zeros_like(stacked)
    acc1 = jnp.zeros_like(stacked)
    for t in range(K * K):
        kh, kw = divmod(t, K)
        s = (kh - pad) * W + (kw - pad)
        sh = (-s) % HWp
        shifted = pltpu.roll(stacked, sh, axis=1) if sh else stacked
        term = wmask_ref[t] * shifted                            # (2*Nb, HWp)
        if t & 1:
            acc1 = acc1 + term
        else:
            acc0 = acc0 + term
    tot = acc0 + acc1                                            # (2*Nb, HWp)
    sa = jax.nn.sigmoid(tot[:Nb, :] + tot[Nb:, :])               # (Nb, HWp)

    # ---- spatial gating; lane-dense output store
    out_ref[...] = (out_ref[...].astype(jnp.float32)
                    * sa[:, None, :]).astype(out_ref.dtype)


def _build_wmask(w_sa, H, W, K, HWp):
    """(K*K, 2, HWp): conv weight folded with the SAME zero-padding validity mask."""
    pad = K // 2
    i_idx = jnp.arange(H, dtype=jnp.int32)[:, None]
    j_idx = jnp.arange(W, dtype=jnp.int32)[None, :]
    masks = []
    for kh in range(K):
        for kw in range(K):
            dh, dw = kh - pad, kw - pad
            m = ((i_idx + dh >= 0) & (i_idx + dh < H) &
                 (j_idx + dw >= 0) & (j_idx + dw < W))
            masks.append(m.reshape(H * W))
    mask = jnp.stack(masks, axis=0).astype(jnp.float32)          # (K*K, HW)
    if HWp != H * W:
        mask = jnp.pad(mask, ((0, 0), (0, HWp - H * W)))         # pad lanes contribute 0
    w = jnp.asarray(w_sa, jnp.float32).reshape(2, K * K)         # (channel c, tap t=kh*K+kw)
    return w.T[:, :, None] * mask[:, None, :]                    # (K*K, 2, HWp)


def _vmem_plan(N, C, HWp, K, in_itemsize, out_itemsize, block_n=None):
    """Pick the batch block Nb and a scoped-VMEM limit from the device's capacity
    (64 MiB/core on v7x, 128 MiB on v5e/v6e)."""
    try:
        cap = int(pltpu.get_tpu_info().vmem_capacity_bytes)
    except Exception:
        cap = 64 << 20                                   # conservative default (v7x)
    limit = min(cap * 3 // 4, 100 << 20)
    budget = limit // 2                                  # ~24 MiB v7x, ~48 MiB v5e/v6e
    # x + out blocks double-buffered, plus ~2 full-size f32 in-kernel temporaries
    per_sample = C * HWp * (2 * in_itemsize + 2 * out_itemsize + 8)
    # the pre-expanded weight-mask (K*K, 2*Nb, HWp) f32, double-buffered
    per_sample += 16 * K * K * HWp
    if block_n is None:
        nb = max(1, budget // per_sample)
        nb = min(nb, N)
        if N >= 2:
            nb = min(nb, (N + 1) // 2)   # >=2 grid steps so v7x megacore can split the batch
        nb = int(max(1, nb))
    else:
        nb = int(max(1, min(int(block_n), N)))
    # TODO(synk): add an HW- or C-tiling fallback when one sample alone exceeds the budget.
    limit = int(max(limit, min(nb * per_sample + (8 << 20), cap - (2 << 20))))
    return nb, limit


def cbam_pallas(x, w1, w2, w_sa, kernel_size=7, block_n=None):
    assert kernel_size % 2 == 1, "SAME padding requires odd kernel_size"
    N, C, H, W = x.shape
    mid = w1.shape[0]
    K = kernel_size
    HW = H * W
    HWp = max(128, ((HW + 127) // 128) * 128)            # lane-dense last dim

    x2 = x.reshape(N, C, HW)                             # keep caller dtype (bf16 ok)
    if HWp != HW:
        x2 = jnp.pad(x2, ((0, 0), (0, 0), (0, HWp - HW)))
    out_dtype = x2.dtype

    Nb, vmem_limit = _vmem_plan(N, C, HWp, K, x2.dtype.itemsize,
                                jnp.dtype(out_dtype).itemsize, block_n)

    w1t = jnp.asarray(w1, jnp.float32).T                 # (C, mid)
    w2t = jnp.asarray(w2, jnp.float32).T                 # (mid, C)
    wmask = _build_wmask(w_sa, H, W, K, HWp)             # (K*K, 2, HWp)
    wmask = jnp.repeat(wmask, Nb, axis=1)                # (K*K, 2*Nb, HWp): [max xNb | avg xNb]

    grid = (pl.cdiv(N, Nb),)
    out2 = pl.pallas_call(
        functools.partial(_cbam_kernel, W=W, K=K, inv_hw=1.0 / HW),
        grid=grid,
        in_specs=[
            pl.BlockSpec((Nb, C, HWp), lambda b: (b, 0, 0)),
            pl.BlockSpec((C, mid), lambda b: (0, 0)),
            pl.BlockSpec((mid, C), lambda b: (0, 0)),
            pl.BlockSpec((K * K, 2 * Nb, HWp), lambda b: (0, 0, 0)),
        ],
        out_specs=pl.BlockSpec((Nb, C, HWp), lambda b: (b, 0, 0)),
        out_shape=jax.ShapeDtypeStruct((N, C, HWp), out_dtype),
        compiler_params=pltpu.CompilerParams(
            dimension_semantics=("parallel",),
            vmem_limit_bytes=vmem_limit),
    )(x2, w1t, w2t, wmask)

    if HWp != HW:
        out2 = out2[:, :, :HW]
    return out2.reshape(N, C, H, W)


def cbam_ref(x, w1, w2, w_sa):
    # pure-JAX reference for correctness checking (full f32 precision)
    hp = jax.lax.Precision.HIGHEST
    pooled = jnp.mean(x, axis=(2, 3), keepdims=True)
    h = jax.nn.relu(jnp.einsum('oc,nchw->nohw', w1, pooled, precision=hp))
    att = jax.nn.sigmoid(jnp.einsum('oc,nchw->nohw', w2, h, precision=hp))
    ca = att * x
    maxp = jnp.max(ca, axis=1, keepdims=True)
    avgp = jnp.mean(ca, axis=1, keepdims=True)
    sa_in = jnp.concatenate([maxp, avgp], axis=1)
    conv = jax.lax.conv_general_dilated(
        sa_in, w_sa, window_strides=(1, 1), padding='SAME',
        dimension_numbers=('NCHW', 'OIHW', 'NCHW'), precision=hp)
    return jax.nn.sigmoid(conv) * ca


if __name__ == "__main__":
    # channels must be >= reduction so channels // reduction >= 1
    N, C, H, W = 4, 32, 16, 16
    reduction, ksize = 16, 7
    mid = C // reduction

    key = jax.random.PRNGKey(0)
    kx, k1, k2, k3 = jax.random.split(key, 4)
    x = jax.random.normal(kx, (N, C, H, W), jnp.float32)
    # Conv2d(C, mid, 1, bias=False).weight  -> (mid, C, 1, 1), squeezed to (mid, C)
    w1 = jax.random.normal(k1, (mid, C), jnp.float32) * 0.3
    # Conv2d(mid, C, 1, bias=False).weight  -> (C, mid, 1, 1), squeezed to (C, mid)
    w2 = jax.random.normal(k2, (C, mid), jnp.float32) * 0.3
    # Conv2d(2, 1, 7, padding=3, bias=False).weight -> (1, 2, 7, 7)
    w_sa = jax.random.normal(k3, (1, 2, ksize, ksize), jnp.float32) * 0.1

    out = cbam_pallas(x, w1, w2, w_sa, kernel_size=ksize)
    out = jax.block_until_ready(out)

    ref = cbam_ref(x, w1, w2, w_sa)
    err = float(jnp.max(jnp.abs(out - ref)))
    # default-precision MXU matmuls in the channel MLP -> tolerance 1e-3
    if not err < 1e-3:
        raise AssertionError(f"Pallas CBAM mismatch vs reference: max abs err {err}")
    print("KERNEL_OK")
</pallas_src>

<mosaic_0001>
module attributes {stable_mosaic.version = 11 : i64} {
  func.func @_cbam_kernel(%arg0: i32, %arg1: memref<2x32x256xf32, #tpu.memory_space<vmem>>, %arg2: memref<32x2xf32, #tpu.memory_space<vmem>>, %arg3: memref<2x32xf32, #tpu.memory_space<vmem>>, %arg4: memref<49x4x256xf32, #tpu.memory_space<vmem>>, %arg5: memref<2x32x256xf32, #tpu.memory_space<vmem>>) attributes {dimension_semantics = [#tpu.dimension_semantics<parallel>], iteration_bounds = array<i64: 2>, scalar_prefetch = 0 : i64, scratch_operands = 0 : i64, tpu.core_type = #tpu.core_type<tc>, window_params = [{transform_indices = @transform_0, window_bounds = array<i64: 2, 32, 256>}, {pipeline_mode = #tpu.pipeline_mode<synchronous>, transform_indices = @transform_1, window_bounds = array<i64: 32, 2>}, {pipeline_mode = #tpu.pipeline_mode<synchronous>, transform_indices = @transform_2, window_bounds = array<i64: 2, 32>}, {pipeline_mode = #tpu.pipeline_mode<synchronous>, transform_indices = @transform_3, window_bounds = array<i64: 49, 4, 256>}, {transform_indices = @transform_4, window_bounds = array<i64: 2, 32, 256>}]} {
    %c0 = arith.constant 0 : index
    %c0_0 = arith.constant 0 : index
    %c0_1 = arith.constant 0 : index
    %0 = vector.load %arg1[%c0, %c0_0, %c0_1] : memref<2x32x256xf32, #tpu.memory_space<vmem>>, vector<2x32x256xf32>
    %cst = arith.constant dense<0.000000e+00> : vector<2x32xf32>
    %1 = vector.multi_reduction <add>, %0, %cst [2] : vector<2x32x256xf32> to vector<2x32xf32>
    %cst_2 = arith.constant 3.906250e-03 : f32
    %2 = vector.broadcast %cst_2 : f32 to vector<2x32xf32>
    %3 = arith.mulf %1, %2 : vector<2x32xf32>
    %c0_3 = arith.constant 0 : index
    %c0_4 = arith.constant 0 : index
    %4 = vector.load %arg2[%c0_3, %c0_4] : memref<32x2xf32, #tpu.memory_space<vmem>>, vector<32x2xf32>
    %cst_5 = arith.constant dense<0.000000e+00> : vector<2x2xf32>
    %5 = tpu.matmul %3, %4, %cst_5 {dimension_numbers = #tpu.dot_dimension_numbers<[1], [0], [0], [1], [0, 0, 1, 1], [], []>} : vector<2x32xf32>, vector<32x2xf32>, vector<2x2xf32> -> vector<2x2xf32>
    %cst_6 = arith.constant 0.000000e+00 : f32
    %6 = vector.broadcast %cst_6 : f32 to vector<2x2xf32>
    %7 = arith.maximumf %5, %6 : vector<2x2xf32>
    %c0_7 = arith.constant 0 : index
    %c0_8 = arith.constant 0 : index
    %8 = vector.load %arg3[%c0_7, %c0_8] : memref<2x32xf32, #tpu.memory_space<vmem>>, vector<2x32xf32>
    %cst_9 = arith.constant dense<0.000000e+00> : vector<2x32xf32>
    %9 = tpu.matmul %7, %8, %cst_9 {dimension_numbers = #tpu.dot_dimension_numbers<[1], [0], [0], [1], [0, 0, 1, 1], [], []>} : vector<2x2xf32>, vector<2x32xf32>, vector<2x32xf32> -> vector<2x32xf32>
    %10 = arith.negf %9 : vector<2x32xf32>
    %11 = math.exp %10 : vector<2x32xf32>
    %cst_10 = arith.constant 1.000000e+00 : f32
    %12 = vector.broadcast %cst_10 : f32 to vector<2x32xf32>
    %13 = arith.addf %12, %11 : vector<2x32xf32>
    %14 = arith.divf %12, %13 : vector<2x32xf32>
    %15 = vector.shape_cast %14 : vector<2x32xf32> to vector<2x32x1xf32>
    %16 = vector.broadcast %15 : vector<2x32x1xf32> to vector<2x32x256xf32>
    %17 = arith.mulf %0, %16 : vector<2x32x256xf32>
    %c0_11 = arith.constant 0 : index
    %c0_12 = arith.constant 0 : index
    %c0_13 = arith.constant 0 : index
    %18 = vector.load %arg5[%c0_11, %c0_12, %c0_13] : memref<2x32x256xf32, #tpu.memory_space<vmem>>, vector<2x32x256xf32>
    tpu.vector_store %arg5[%c0_11, %c0_12, %c0_13], %17 {strides = array<i32>} : memref<2x32x256xf32, #tpu.memory_space<vmem>>, vector<2x32x256xf32>,
    %c0_14 = arith.constant 0 : index
    %c0_15 = arith.constant 0 : index
    %c0_16 = arith.constant 0 : index
    %19 = vector.load %arg5[%c0_14, %c0_15, %c0_16] : memref<2x32x256xf32, #tpu.memory_space<vmem>>, vector<2x32x256xf32>
    %cst_17 = arith.constant dense<0xFF800000> : vector<2x256xf32>
    %20 = vector.multi_reduction <maximumf>, %19, %cst_17 [1] : vector<2x32x256xf32> to vector<2x256xf32>
    %cst_18 = arith.constant dense<0.000000e+00> : vector<2x256xf32>
    %21 = vector.multi_reduction <add>, %19, %cst_18 [1] : vector<2x32x256xf32> to vector<2x256xf32>
    %cst_19 = arith.constant 3.200000e+01 : f32
    %22 = vector.broadcast %cst_19 : f32 to vector<2x256xf32>
    %23 = arith.divf %21, %22 : vector<2x256xf32>
    %24 = tpu.concatenate %20, %23 in 0 : vector<2x256xf32>, vector<2x256xf32> -> vector<4x256xf32>
    %cst_20 = arith.constant 0.000000e+00 : f32
    %25 = vector.broadcast %cst_20 : f32 to vector<4x256xf32>
    %cst_21 = arith.constant 0.000000e+00 : f32
    %26 = vector.broadcast %cst_21 : f32 to vector<4x256xf32>
    %c51_i32 = arith.constant 51 : i32
    %27 = tpu.dynamic_rotate %24 by %c51_i32 dim 1 : vector<4x256xf32>, i32 -> vector<4x256xf32>
    %c0_22 = arith.constant 0 : index
    %c0_23 = arith.constant 0 : index
    %c0_24 = arith.constant 0 : index
    %28 = vector.load %arg4[%c0_22, %c0_23, %c0_24] : memref<49x4x256xf32, #tpu.memory_space<vmem>>, vector<1x4x256xf32>
    %29 = vector.shape_cast %28 : vector<1x4x256xf32> to vector<4x256xf32>
    %30 = arith.mulf %29, %27 : vector<4x256xf32>
    %31 = arith.addf %25, %30 : vector<4x256xf32>
    %c50_i32 = arith.constant 50 : i32
    %32 = tpu.dynamic_rotate %24 by %c50_i32 dim 1 : vector<4x256xf32>, i32 -> vector<4x256xf32>
    %c1 = arith.constant 1 : index
    %c0_25 = arith.constant 0 : index
    %c0_26 = arith.constant 0 : index
    %33 = vector.load %arg4[%c1, %c0_25, %c0_26] : memref<49x4x256xf32, #tpu.memory_space<vmem>>, vector<1x4x256xf32>
    %34 = vector.shape_cast %33 : vector<1x4x256xf32> to vector<4x256xf32>
    %35 = arith.mulf %34, %32 : vector<4x256xf32>
    %36 = arith.addf %26, %35 : vector<4x256xf32>
    %c49_i32 = arith.constant 49 : i32
    %37 = tpu.dynamic_rotate %24 by %c49_i32 dim 1 : vector<4x256xf32>, i32 -> vector<4x256xf32>
    %c2 = arith.constant 2 : index
    %c0_27 = arith.constant 0 : index
    %c0_28 = arith.constant 0 : index
    %38 = vector.load %arg4[%c2, %c0_27, %c0_28] : memref<49x4x256xf32, #tpu.memory_space<vmem>>, vector<1x4x256xf32>
    %39 = vector.shape_cast %38 : vector<1x4x256xf32> to vector<4x256xf32>
    %40 = arith.mulf %39, %37 : vector<4x256xf32>
    %41 = arith.addf %31, %40 : vector<4x256xf32>
    %c48_i32 = arith.constant 48 : i32
    %42 = tpu.dynamic_rotate %24 by %c48_i32 dim 1 : vector<4x256xf32>, i32 -> vector<4x256xf32>
    %c3 = arith.constant 3 : index
    %c0_29 = arith.constant 0 : index
    %c0_30 = arith.constant 0 : index
    %43 = vector.load %arg4[%c3, %c0_29, %c0_30] : memref<49x4x256xf32, #tpu.memory_space<vmem>>, vector<1x4x256xf32>
    %44 = vector.shape_cast %43 : vector<1x4x256xf32> to vector<4x256xf32>
    %45 = arith.mulf %44, %42 : vector<4x256xf32>
    %46 = arith.addf %36, %45 : vector<4x256xf32>
    %c47_i32 = arith.constant 47 : i32
    %47 = tpu.dynamic_rotate %24 by %c47_i32 dim 1 : vector<4x256xf32>, i32 -> vector<4x256xf32>
    %c4 = arith.constant 4 : index
    %c0_31 = arith.constant 0 : index
    %c0_32 = arith.constant 0 : index
    %48 = vector.load %arg4[%c4, %c0_31, %c0_32] : memref<49x4x256xf32, #tpu.memory_space<vmem>>, vector<1x4x256xf32>
    %49 = vector.shape_cast %48 : vector<1x4x256xf32> to vector<4x256xf32>
    %50 = arith.mulf %49, %47 : vector<4x256xf32>
    %51 = arith.addf %41, %50 : vector<4x256xf32>
    %c46_i32 = arith.constant 46 : i32
    %52 = tpu.dynamic_rotate %24 by %c46_i32 dim 1 : vector<4x256xf32>, i32 -> vector<4x256xf32>
    %c5 = arith.constant 5 : index
    %c0_33 = arith.constant 0 : index
    %c0_34 = arith.constant 0 : index
    %53 = vector.load %arg4[%c5, %c0_33, %c0_34] : memref<49x4x256xf32, #tpu.memory_space<vmem>>, vector<1x4x256xf32>
    %54 = vector.shape_cast %53 : vector<1x4x256xf32> to vector<4x256xf32>
    %55 = arith.mulf %54, %52 : vector<4x256xf32>
    %56 = arith.addf %46, %55 : vector<4x256xf32>
    %c45_i32 = arith.constant 45 : i32
    %57 = tpu.dynamic_rotate %24 by %c45_i32 dim 1 : vector<4x256xf32>, i32 -> vector<4x256xf32>
    %c6 = arith.constant 6 : index
    %c0_35 = arith.constant 0 : index
    %c0_36 = arith.constant 0 : index
    %58 = vector.load %arg4[%c6, %c0_35, %c0_36] : memref<49x4x256xf32, #tpu.memory_space<vmem>>, vector<1x4x256xf32>
    %59 = vector.shape_cast %58 : vector<1x4x256xf32> to vector<4x256xf32>
    %60 = arith.mulf %59, %57 : vector<4x256xf32>
    %61 = arith.addf %51, %60 : vector<4x256xf32>
    %c35_i32 = arith.constant 35 : i32
    %62 = tpu.dynamic_rotate %24 by %c35_i32 dim 1 : vector<4x256xf32>, i32 -> vector<4x256xf32>
    %c7 = arith.constant 7 : index
    %c0_37 = arith.constant 0 : index
    %c0_38 = arith.constant 0 : index
    %63 = vector.load %arg4[%c7, %c0_37, %c0_38] : memref<49x4x256xf32, #tpu.memory_space<vmem>>, vector<1x4x256xf32>
    %64 = vector.shape_cast %63 : vector<1x4x256xf32> to vector<4x256xf32>
    %65 = arith.mulf %64, %62 : vector<4x256xf32>
    %66 = arith.addf %56, %65 : vector<4x256xf32>
    %c34_i32 = arith.constant 34 : i32
    %67 = tpu.dynamic_rotate %24 by %c34_i32 dim 1 : vector<4x256xf32>, i32 -> vector<4x256xf32>
    %c8 = arith.constant 8 : index
    %c0_39 = arith.constant 0 : index
    %c0_40 = arith.constant 0 : index
    %68 = vector.load %arg4[%c8, %c0_39, %c0_40] : memref<49x4x256xf32, #tpu.memory_space<vmem>>, vector<1x4x256xf32>
    %69 = vector.shape_cast %68 : vector<1x4x256xf32> to vector<4x256xf32>
    %70 = arith.mulf %69, %67 : vector<4x256xf32>
    %71 = arith.addf %61, %70 : vector<4x256xf32>
    %c33_i32 = arith.constant 33 : i32
    %72 = tpu.dynamic_rotate %24 by %c33_i32 dim 1 : vector<4x256xf32>, i32 -> vector<4x256xf32>
    %c9 = arith.constant 9 : index
    %c0_41 = arith.constant 0 : index
    %c0_42 = arith.constant 0 : index
    %73 = vector.load %arg4[%c9, %c0_41, %c0_42] : memref<49x4x256xf32, #tpu.memory_space<vmem>>, vector<1x4x256xf32>
    %74 = vector.shape_cast %73 : vector<1x4x256xf32> to vector<4x256xf32>
    %75 = arith.mulf %74, %72 : vector<4x256xf32>
    %76 = arith.addf %66, %75 : vector<4x256xf32>
    %c32_i32 = arith.constant 32 : i32
    %77 = tpu.dynamic_rotate %24 by %c32_i32 dim 1 : vector<4x256xf32>, i32 -> vector<4x256xf32>
    %c10 = arith.constant 10 : index
    %c0_43 = arith.constant 0 : index
    %c0_44 = arith.constant 0 : index
    %78 = vector.load %arg4[%c10, %c0_43, %c0_44] : memref<49x4x256xf32, #tpu.memory_space<vmem>>, vector<1x4x256xf32>
    %79 = vector.shape_cast %78 : vector<1x4x256xf32> to vector<4x256xf32>
    %80 = arith.mulf %79, %77 : vector<4x256xf32>
    %81 = arith.addf %71, %80 : vector<4x256xf32>
    %c31_i32 = arith.constant 31 : i32
    %82 = tpu.dynamic_rotate %24 by %c31_i32 dim 1 : vector<4x256xf32>, i32 -> vector<4x256xf32>
    %c11 = arith.constant 11 : index
    %c0_45 = arith.constant 0 : index
    %c0_46 = arith.constant 0 : index
    %83 = vector.load %arg4[%c11, %c0_45, %c0_46] : memref<49x4x256xf32, #tpu.memory_space<vmem>>, vector<1x4x256xf32>
    %84 = vector.shape_cast %83 : vector<1x4x256xf32> to vector<4x256xf32>
    %85 = arith.mulf %84, %82 : vector<4x256xf32>
    %86 = arith.addf %76, %85 : vector<4x256xf32>
    %c30_i32 = arith.constant 30 : i32
    %87 = tpu.dynamic_rotate %24 by %c30_i32 dim 1 : vector<4x256xf32>, i32 -> vector<4x256xf32>
    %c12 = arith.constant 12 : index
    %c0_47 = arith.constant 0 : index
    %c0_48 = arith.constant 0 : index
    %88 = vector.load %arg4[%c12, %c0_47, %c0_48] : memref<49x4x256xf32, #tpu.memory_space<vmem>>, vector<1x4x256xf32>
    %89 = vector.shape_cast %88 : vector<1x4x256xf32> to vector<4x256xf32>
    %90 = arith.mulf %89, %87 : vector<4x256xf32>
    %91 = arith.addf %81, %90 : vector<4x256xf32>
    %c29_i32 = arith.constant 29 : i32
    %92 = tpu.dynamic_rotate %24 by %c29_i32 dim 1 : vector<4x256xf32>, i32 -> vector<4x256xf32>
    %c13 = arith.constant 13 : index
    %c0_49 = arith.constant 0 : index
    %c0_50 = arith.constant 0 : index
    %93 = vector.load %arg4[%c13, %c0_49, %c0_50] : memref<49x4x256xf32, #tpu.memory_space<vmem>>, vector<1x4x256xf32>
    %94 = vector.shape_cast %93 : vector<1x4x256xf32> to vector<4x256xf32>
    %95 = arith.mulf %94, %92 : vector<4x256xf32>
    %96 = arith.addf %86, %95 : vector<4x256xf32>
    %c19_i32 = arith.constant 19 : i32
    %97 = tpu.dynamic_rotate %24 by %c19_i32 dim 1 : vector<4x256xf32>, i32 -> vector<4x256xf32>
    %c14 = arith.constant 14 : index
    %c0_51 = arith.constant 0 : index
    %c0_52 = arith.constant 0 : index
    %98 = vector.load %arg4[%c14, %c0_51, %c0_52] : memref<49x4x256xf32, #tpu.memory_space<vmem>>, vector<1x4x256xf32>
    %99 = vector.shape_cast %98 : vector<1x4x256xf32> to vector<4x256xf32>
    %100 = arith.mulf %99, %97 : vector<4x256xf32>
    %101 = arith.addf %91, %100 : vector<4x256xf32>
    %c18_i32 = arith.constant 18 : i32
    %102 = tpu.dynamic_rotate %24 by %c18_i32 dim 1 : vector<4x256xf32>, i32 -> vector<4x256xf32>
    %c15 = arith.constant 15 : index
    %c0_53 = arith.constant 0 : index
    %c0_54 = arith.constant 0 : index
    %103 = vector.load %arg4[%c15, %c0_53, %c0_54] : memref<49x4x256xf32, #tpu.memory_space<vmem>>, vector<1x4x256xf32>
    %104 = vector.shape_cast %103 : vector<1x4x256xf32> to vector<4x256xf32>
    %105 = arith.mulf %104, %102 : vector<4x256xf32>
    %106 = arith.addf %96, %105 : vector<4x256xf32>
    %c17_i32 = arith.constant 17 : i32
    %107 = tpu.dynamic_rotate %24 by %c17_i32 dim 1 : vector<4x256xf32>, i32 -> vector<4x256xf32>
    %c16 = arith.constant 16 : index
    %c0_55 = arith.constant 0 : index
    %c0_56 = arith.constant 0 : index
    %108 = vector.load %arg4[%c16, %c0_55, %c0_56] : memref<49x4x256xf32, #tpu.memory_space<vmem>>, vector<1x4x256xf32>
    %109 = vector.shape_cast %108 : vector<1x4x256xf32> to vector<4x256xf32>
    %110 = arith.mulf %109, %107 : vector<4x256xf32>
    %111 = arith.addf %101, %110 : vector<4x256xf32>
    %c16_i32 = arith.constant 16 : i32
    %112 = tpu.dynamic_rotate %24 by %c16_i32 dim 1 : vector<4x256xf32>, i32 -> vector<4x256xf32>
    %c17 = arith.constant 17 : index
    %c0_57 = arith.constant 0 : index
    %c0_58 = arith.constant 0 : index
    %113 = vector.load %arg4[%c17, %c0_57, %c0_58] : memref<49x4x256xf32, #tpu.memory_space<vmem>>, vector<1x4x256xf32>
    %114 = vector.shape_cast %113 : vector<1x4x256xf32> to vector<4x256xf32>
    %115 = arith.mulf %114, %112 : vector<4x256xf32>
    %116 = arith.addf %106, %115 : vector<4x256xf32>
    %c15_i32 = arith.constant 15 : i32
    %117 = tpu.dynamic_rotate %24 by %c15_i32 dim 1 : vector<4x256xf32>, i32 -> vector<4x256xf32>
    %c18 = arith.constant 18 : index
    %c0_59 = arith.constant 0 : index
    %c0_60 = arith.constant 0 : index
    %118 = vector.load %arg4[%c18, %c0_59, %c0_60] : memref<49x4x256xf32, #tpu.memory_space<vmem>>, vector<1x4x256xf32>
    %119 = vector.shape_cast %118 : vector<1x4x256xf32> to vector<4x256xf32>
    %120 = arith.mulf %119, %117 : vector<4x256xf32>
    %121 = arith.addf %111, %120 : vector<4x256xf32>
    %c14_i32 = arith.constant 14 : i32
    %122 = tpu.dynamic_rotate %24 by %c14_i32 dim 1 : vector<4x256xf32>, i32 -> vector<4x256xf32>
    %c19 = arith.constant 19 : index
    %c0_61 = arith.constant 0 : index
    %c0_62 = arith.constant 0 : index
    %123 = vector.load %arg4[%c19, %c0_61, %c0_62] : memref<49x4x256xf32, #tpu.memory_space<vmem>>, vector<1x4x256xf32>
    %124 = vector.shape_cast %123 : vector<1x4x256xf32> to vector<4x256xf32>
    %125 = arith.mulf %124, %122 : vector<4x256xf32>
    %126 = arith.addf %116, %125 : vector<4x256xf32>
    %c13_i32 = arith.constant 13 : i32
    %127 = tpu.dynamic_rotate %24 by %c13_i32 dim 1 : vector<4x256xf32>, i32 -> vector<4x256xf32>
    %c20 = arith.constant 20 : index
    %c0_63 = arith.constant 0 : index
    %c0_64 = arith.constant 0 : index
    %128 = vector.load %arg4[%c20, %c0_63, %c0_64] : memref<49x4x256xf32, #tpu.memory_space<vmem>>, vector<1x4x256xf32>
    %129 = vector.shape_cast %128 : vector<1x4x256xf32> to vector<4x256xf32>
    %130 = arith.mulf %129, %127 : vector<4x256xf32>
    %131 = arith.addf %121, %130 : vector<4x256xf32>
    %c3_i32 = arith.constant 3 : i32
    %132 = tpu.dynamic_rotate %24 by %c3_i32 dim 1 : vector<4x256xf32>, i32 -> vector<4x256xf32>
    %c21 = arith.constant 21 : index
    %c0_65 = arith.constant 0 : index
    %c0_66 = arith.constant 0 : index
    %133 = vector.load %arg4[%c21, %c0_65, %c0_66] : memref<49x4x256xf32, #tpu.memory_space<vmem>>, vector<1x4x256xf32>
    %134 = vector.shape_cast %133 : vector<1x4x256xf32> to vector<4x256xf32>
    %135 = arith.mulf %134, %132 : vector<4x256xf32>
    %136 = arith.addf %126, %135 : vector<4x256xf32>
    %c2_i32 = arith.constant 2 : i32
    %137 = tpu.dynamic_rotate %24 by %c2_i32 dim 1 : vector<4x256xf32>, i32 -> vector<4x256xf32>
    %c22 = arith.constant 22 : index
    %c0_67 = arith.constant 0 : index
    %c0_68 = arith.constant 0 : index
    %138 = vector.load %arg4[%c22, %c0_67, %c0_68] : memref<49x4x256xf32, #tpu.memory_space<vmem>>, vector<1x4x256xf32>
    %139 = vector.shape_cast %138 : vector<1x4x256xf32> to vector<4x256xf32>
    %140 = arith.mulf %139, %137 : vector<4x256xf32>
    %141 = arith.addf %131, %140 : vector<4x256xf32>
    %c1_i32 = arith.constant 1 : i32
    %142 = tpu.dynamic_rotate %24 by %c1_i32 dim 1 : vector<4x256xf32>, i32 -> vector<4x256xf32>
    %c23 = arith.constant 23 : index
    %c0_69 = arith.constant 0 : index
    %c0_70 = arith.constant 0 : index
    %143 = vector.load %arg4[%c23, %c0_69, %c0_70] : memref<49x4x256xf32, #tpu.memory_space<vmem>>, vector<1x4x256xf32>
    %144 = vector.shape_cast %143 : vector<1x4x256xf32> to vector<4x256xf32>
    %145 = arith.mulf %144, %142 : vector<4x256xf32>
    %146 = arith.addf %136, %145 : vector<4x256xf32>
    %c24 = arith.constant 24 : index
    %c0_71 = arith.constant 0 : index
    %c0_72 = arith.constant 0 : index
    %147 = vector.load %arg4[%c24, %c0_71, %c0_72] : memref<49x4x256xf32, #tpu.memory_space<vmem>>, vector<1x4x256xf32>
    %148 = vector.shape_cast %147 : vector<1x4x256xf32> to vector<4x256xf32>
    %149 = arith.mulf %148, %24 : vector<4x256xf32>
    %150 = arith.addf %141, %149 : vector<4x256xf32>
    %c255_i32 = arith.constant 255 : i32
    %151 = tpu.dynamic_rotate %24 by %c255_i32 dim 1 : vector<4x256xf32>, i32 -> vector<4x256xf32>
    %c25 = arith.constant 25 : index
    %c0_73 = arith.constant 0 : index
    %c0_74 = arith.constant 0 : index
    %152 = vector.load %arg4[%c25, %c0_73, %c0_74] : memref<49x4x256xf32, #tpu.memory_space<vmem>>, vector<1x4x256xf32>
    %153 = vector.shape_cast %152 : vector<1x4x256xf32> to vector<4x256xf32>
    %154 = arith.mulf %153, %151 : vector<4x256xf32>
    %155 = arith.addf %146, %154 : vector<4x256xf32>
    %c254_i32 = arith.constant 254 : i32
    %156 = tpu.dynamic_rotate %24 by %c254_i32 dim 1 : vector<4x256xf32>, i32 -> vector<4x256xf32>
    %c26 = arith.constant 26 : index
    %c0_75 = arith.constant 0 : index
    %c0_76 = arith.constant 0 : index
    %157 = vector.load %arg4[%c26, %c0_75, %c0_76] : memref<49x4x256xf32, #tpu.memory_space<vmem>>, vector<1x4x256xf32>
    %158 = vector.shape_cast %157 : vector<1x4x256xf32> to vector<4x256xf32>
    %159 = arith.mulf %158, %156 : vector<4x256xf32>
    %160 = arith.addf %150, %159 : vector<4x256xf32>
    %c253_i32 = arith.constant 253 : i32
    %161 = tpu.dynamic_rotate %24 by %c253_i32 dim 1 : vector<4x256xf32>, i32 -> vector<4x256xf32>
    %c27 = arith.constant 27 : index
    %c0_77 = arith.constant 0 : index
    %c0_78 = arith.constant 0 : index
    %162 = vector.load %arg4[%c27, %c0_77, %c0_78] : memref<49x4x256xf32, #tpu.memory_space<vmem>>, vector<1x4x256xf32>
    %163 = vector.shape_cast %162 : vector<1x4x256xf32> to vector<4x256xf32>
    %164 = arith.mulf %163, %161 : vector<4x256xf32>
    %165 = arith.addf %155, %164 : vector<4x256xf32>
    %c243_i32 = arith.constant 243 : i32
    %166 = tpu.dynamic_rotate %24 by %c243_i32 dim 1 : vector<4x256xf32>, i32 -> vector<4x256xf32>
    %c28 = arith.constant 28 : index
    %c0_79 = arith.constant 0 : index
    %c0_80 = arith.constant 0 : index
    %167 = vector.load %arg4[%c28, %c0_79, %c0_80] : memref<49x4x256xf32, #tpu.memory_space<vmem>>, vector<1x4x256xf32>
    %168 = vector.shape_cast %167 : vector<1x4x256xf32> to vector<4x256xf32>
    %169 = arith.mulf %168, %166 : vector<4x256xf32>
    %170 = arith.addf %160, %169 : vector<4x256xf32>
    %c242_i32 = arith.constant 242 : i32
    %171 = tpu.dynamic_rotate %24 by %c242_i32 dim 1 : vector<4x256xf32>, i32 -> vector<4x256xf32>
    %c29 = arith.constant 29 : index
    %c0_81 = arith.constant 0 : index
    %c0_82 = arith.constant 0 : index
    %172 = vector.load %arg4[%c29, %c0_81, %c0_82] : memref<49x4x256xf32, #tpu.memory_space<vmem>>, vector<1x4x256xf32>
    %173 = vector.shape_cast %172 : vector<1x4x256xf32> to vector<4x256xf32>
    %174 = arith.mulf %173, %171 : vector<4x256xf32>
    %175 = arith.addf %165, %174 : vector<4x256xf32>
    %c241_i32 = arith.constant 241 : i32
    %176 = tpu.dynamic_rotate %24 by %c241_i32 dim 1 : vector<4x256xf32>, i32 -> vector<4x256xf32>
    %c30 = arith.constant 30 : index
    %c0_83 = arith.constant 0 : index
    %c0_84 = arith.constant 0 : index
    %177 = vector.load %arg4[%c30, %c0_83, %c0_84] : memref<49x4x256xf32, #tpu.memory_space<vmem>>, vector<1x4x256xf32>
    %178 = vector.shape_cast %177 : vector<1x4x256xf32> to vector<4x256xf32>
    %179 = arith.mulf %178, %176 : vector<4x256xf32>
    %180 = arith.addf %170, %179 : vector<4x256xf32>
    %c240_i32 = arith.constant 240 : i32
    %181 = tpu.dynamic_rotate %24 by %c240_i32 dim 1 : vector<4x256xf32>, i32 -> vector<4x256xf32>
    %c31 = arith.constant 31 : index
    %c0_85 = arith.constant 0 : index
    %c0_86 = arith.constant 0 : index
    %182 = vector.load %arg4[%c31, %c0_85, %c0_86] : memref<49x4x256xf32, #tpu.memory_space<vmem>>, vector<1x4x256xf32>
    %183 = vector.shape_cast %182 : vector<1x4x256xf32> to vector<4x256xf32>
    %184 = arith.mulf %183, %181 : vector<4x256xf32>
    %185 = arith.addf %175, %184 : vector<4x256xf32>
    %c239_i32 = arith.constant 239 : i32
    %186 = tpu.dynamic_rotate %24 by %c239_i32 dim 1 : vector<4x256xf32>, i32 -> vector<4x256xf32>
    %c32 = arith.constant 32 : index
    %c0_87 = arith.constant 0 : index
    %c0_88 = arith.constant 0 : index
    %187 = vector.load %arg4[%c32, %c0_87, %c0_88] : memref<49x4x256xf32, #tpu.memory_space<vmem>>, vector<1x4x256xf32>
    %188 = vector.shape_cast %187 : vector<1x4x256xf32> to vector<4x256xf32>
    %189 = arith.mulf %188, %186 : vector<4x256xf32>
    %190 = arith.addf %180, %189 : vector<4x256xf32>
    %c238_i32 = arith.constant 238 : i32
    %191 = tpu.dynamic_rotate %24 by %c238_i32 dim 1 : vector<4x256xf32>, i32 -> vector<4x256xf32>
    %c33 = arith.constant 33 : index
    %c0_89 = arith.constant 0 : index
    %c0_90 = arith.constant 0 : index
    %192 = vector.load %arg4[%c33, %c0_89, %c0_90] : memref<49x4x256xf32, #tpu.memory_space<vmem>>, vector<1x4x256xf32>
    %193 = vector.shape_cast %192 : vector<1x4x256xf32> to vector<4x256xf32>
    %194 = arith.mulf %193, %191 : vector<4x256xf32>
    %195 = arith.addf %185, %194 : vector<4x256xf32>
    %c237_i32 = arith.constant 237 : i32
    %196 = tpu.dynamic_rotate %24 by %c237_i32 dim 1 : vector<4x256xf32>, i32 -> vector<4x256xf32>
    %c34 = arith.constant 34 : index
    %c0_91 = arith.constant 0 : index
    %c0_92 = arith.constant 0 : index
    %197 = vector.load %arg4[%c34, %c0_91, %c0_92] : memref<49x4x256xf32, #tpu.memory_space<vmem>>, vector<1x4x256xf32>
    %198 = vector.shape_cast %197 : vector<1x4x256xf32> to vector<4x256xf32>
    %199 = arith.mulf %198, %196 : vector<4x256xf32>
    %200 = arith.addf %190, %199 : vector<4x256xf32>
    %c227_i32 = arith.constant 227 : i32
    %201 = tpu.dynamic_rotate %24 by %c227_i32 dim 1 : vector<4x256xf32>, i32 -> vector<4x256xf32>
    %c35 = arith.constant 35 : index
    %c0_93 = arith.constant 0 : index
    %c0_94 = arith.constant 0 : index
    %202 = vector.load %arg4[%c35, %c0_93, %c0_94] : memref<49x4x256xf32, #tpu.memory_space<vmem>>, vector<1x4x256xf32>
    %203 = vector.shape_cast %202 : vector<1x4x256xf32> to vector<4x256xf32>
    %204 = arith.mulf %203, %201 : vector<4x256xf32>
    %205 = arith.addf %195, %204 : vector<4x256xf32>
    %c226_i32 = arith.constant 226 : i32
    %206 = tpu.dynamic_rotate %24 by %c226_i32 dim 1 : vector<4x256xf32>, i32 -> vector<4x256xf32>
    %c36 = arith.constant 36 : index
    %c0_95 = arith.constant 0 : index
    %c0_96 = arith.constant 0 : index
    %207 = vector.load %arg4[%c36, %c0_95, %c0_96] : memref<49x4x256xf32, #tpu.memory_space<vmem>>, vector<1x4x256xf32>
    %208 = vector.shape_cast %207 : vector<1x4x256xf32> to vector<4x256xf32>
    %209 = arith.mulf %208, %206 : vector<4x256xf32>
    %210 = arith.addf %200, %209 : vector<4x256xf32>
    %c225_i32 = arith.constant 225 : i32
    %211 = tpu.dynamic_rotate %24 by %c225_i32 dim 1 : vector<4x256xf32>, i32 -> vector<4x256xf32>
    %c37 = arith.constant 37 : index
    %c0_97 = arith.constant 0 : index
    %c0_98 = arith.constant 0 : index
    %212 = vector.load %arg4[%c37, %c0_97, %c0_98] : memref<49x4x256xf32, #tpu.memory_space<vmem>>, vector<1x4x256xf32>
    %213 = vector.shape_cast %212 : vector<1x4x256xf32> to vector<4x256xf32>
    %214 = arith.mulf %213, %211 : vector<4x256xf32>
    %215 = arith.addf %205, %214 : vector<4x256xf32>
    %c224_i32 = arith.constant 224 : i32
    %216 = tpu.dynamic_rotate %24 by %c224_i32 dim 1 : vector<4x256xf32>, i32 -> vector<4x256xf32>
    %c38 = arith.constant 38 : index
    %c0_99 = arith.constant 0 : index
    %c0_100 = arith.constant 0 : index
    %217 = vector.load %arg4[%c38, %c0_99, %c0_100] : memref<49x4x256xf32, #tpu.memory_space<vmem>>, vector<1x4x256xf32>
    %218 = vector.shape_cast %217 : vector<1x4x256xf32> to vector<4x256xf32>
    %219 = arith.mulf %218, %216 : vector<4x256xf32>
    %220 = arith.addf %210, %219 : vector<4x256xf32>
    %c223_i32 = arith.constant 223 : i32
    %221 = tpu.dynamic_rotate %24 by %c223_i32 dim 1 : vector<4x256xf32>, i32 -> vector<4x256xf32>
    %c39 = arith.constant 39 : index
    %c0_101 = arith.constant 0 : index
    %c0_102 = arith.constant 0 : index
    %222 = vector.load %arg4[%c39, %c0_101, %c0_102] : memref<49x4x256xf32, #tpu.memory_space<vmem>>, vector<1x4x256xf32>
    %223 = vector.shape_cast %222 : vector<1x4x256xf32> to vector<4x256xf32>
    %224 = arith.mulf %223, %221 : vector<4x256xf32>
    %225 = arith.addf %215, %224 : vector<4x256xf32>
    %c222_i32 = arith.constant 222 : i32
    %226 = tpu.dynamic_rotate %24 by %c222_i32 dim 1 : vector<4x256xf32>, i32 -> vector<4x256xf32>
    %c40 = arith.constant 40 : index
    %c0_103 = arith.constant 0 : index
    %c0_104 = arith.constant 0 : index
    %227 = vector.load %arg4[%c40, %c0_103, %c0_104] : memref<49x4x256xf32, #tpu.memory_space<vmem>>, vector<1x4x256xf32>
    %228 = vector.shape_cast %227 : vector<1x4x256xf32> to vector<4x256xf32>
    %229 = arith.mulf %228, %226 : vector<4x256xf32>
    %230 = arith.addf %220, %229 : vector<4x256xf32>
    %c221_i32 = arith.constant 221 : i32
    %231 = tpu.dynamic_rotate %24 by %c221_i32 dim 1 : vector<4x256xf32>, i32 -> vector<4x256xf32>
    %c41 = arith.constant 41 : index
    %c0_105 = arith.constant 0 : index
    %c0_106 = arith.constant 0 : index
    %232 = vector.load %arg4[%c41, %c0_105, %c0_106] : memref<49x4x256xf32, #tpu.memory_space<vmem>>, vector<1x4x256xf32>
    %233 = vector.shape_cast %232 : vector<1x4x256xf32> to vector<4x256xf32>
    %234 = arith.mulf %233, %231 : vector<4x256xf32>
    %235 = arith.addf %225, %234 : vector<4x256xf32>
    %c211_i32 = arith.constant 211 : i32
    %236 = tpu.dynamic_rotate %24 by %c211_i32 dim 1 : vector<4x256xf32>, i32 -> vector<4x256xf32>
    %c42 = arith.constant 42 : index
    %c0_107 = arith.constant 0 : index
    %c0_108 = arith.constant 0 : index
    %237 = vector.load %arg4[%c42, %c0_107, %c0_108] : memref<49x4x256xf32, #tpu.memory_space<vmem>>, vector<1x4x256xf32>
    %238 = vector.shape_cast %237 : vector<1x4x256xf32> to vector<4x256xf32>
    %239 = arith.mulf %238, %236 : vector<4x256xf32>
    %240 = arith.addf %230, %239 : vector<4x256xf32>
    %c210_i32 = arith.constant 210 : i32
    %241 = tpu.dynamic_rotate %24 by %c210_i32 dim 1 : vector<4x256xf32>, i32 -> vector<4x256xf32>
    %c43 = arith.constant 43 : index
    %c0_109 = arith.constant 0 : index
    %c0_110 = arith.constant 0 : index
    %242 = vector.load %arg4[%c43, %c0_109, %c0_110] : memref<49x4x256xf32, #tpu.memory_space<vmem>>, vector<1x4x256xf32>
    %243 = vector.shape_cast %242 : vector<1x4x256xf32> to vector<4x256xf32>
    %244 = arith.mulf %243, %241 : vector<4x256xf32>
    %245 = arith.addf %235, %244 : vector<4x256xf32>
    %c209_i32 = arith.constant 209 : i32
    %246 = tpu.dynamic_rotate %24 by %c209_i32 dim 1 : vector<4x256xf32>, i32 -> vector<4x256xf32>
    %c44 = arith.constant 44 : index
    %c0_111 = arith.constant 0 : index
    %c0_112 = arith.constant 0 : index
    %247 = vector.load %arg4[%c44, %c0_111, %c0_112] : memref<49x4x256xf32, #tpu.memory_space<vmem>>, vector<1x4x256xf32>
    %248 = vector.shape_cast %247 : vector<1x4x256xf32> to vector<4x256xf32>
    %249 = arith.mulf %248, %246 : vector<4x256xf32>
    %250 = arith.addf %240, %249 : vector<4x256xf32>
    %c208_i32 = arith.constant 208 : i32
    %251 = tpu.dynamic_rotate %24 by %c208_i32 dim 1 : vector<4x256xf32>, i32 -> vector<4x256xf32>
    %c45 = arith.constant 45 : index
    %c0_113 = arith.constant 0 : index
    %c0_114 = arith.constant 0 : index
    %252 = vector.load %arg4[%c45, %c0_113, %c0_114] : memref<49x4x256xf32, #tpu.memory_space<vmem>>, vector<1x4x256xf32>
    %253 = vector.shape_cast %252 : vector<1x4x256xf32> to vector<4x256xf32>
    %254 = arith.mulf %253, %251 : vector<4x256xf32>
    %255 = arith.addf %245, %254 : vector<4x256xf32>
    %c207_i32 = arith.constant 207 : i32
    %256 = tpu.dynamic_rotate %24 by %c207_i32 dim 1 : vector<4x256xf32>, i32 -> vector<4x256xf32>
    %c46 = arith.constant 46 : index
    %c0_115 = arith.constant 0 : index
    %c0_116 = arith.constant 0 : index
    %257 = vector.load %arg4[%c46, %c0_115, %c0_116] : memref<49x4x256xf32, #tpu.memory_space<vmem>>, vector<1x4x256xf32>
    %258 = vector.shape_cast %257 : vector<1x4x256xf32> to vector<4x256xf32>
    %259 = arith.mulf %258, %256 : vector<4x256xf32>
    %260 = arith.addf %250, %259 : vector<4x256xf32>
    %c206_i32 = arith.constant 206 : i32
    %261 = tpu.dynamic_rotate %24 by %c206_i32 dim 1 : vector<4x256xf32>, i32 -> vector<4x256xf32>
    %c47 = arith.constant 47 : index
    %c0_117 = arith.constant 0 : index
    %c0_118 = arith.constant 0 : index
    %262 = vector.load %arg4[%c47, %c0_117, %c0_118] : memref<49x4x256xf32, #tpu.memory_space<vmem>>, vector<1x4x256xf32>
    %263 = vector.shape_cast %262 : vector<1x4x256xf32> to vector<4x256xf32>
    %264 = arith.mulf %263, %261 : vector<4x256xf32>
    %265 = arith.addf %255, %264 : vector<4x256xf32>
    %c205_i32 = arith.constant 205 : i32
    %266 = tpu.dynamic_rotate %24 by %c205_i32 dim 1 : vector<4x256xf32>, i32 -> vector<4x256xf32>
    %c48 = arith.constant 48 : index
    %c0_119 = arith.constant 0 : index
    %c0_120 = arith.constant 0 : index
    %267 = vector.load %arg4[%c48, %c0_119, %c0_120] : memref<49x4x256xf32, #tpu.memory_space<vmem>>, vector<1x4x256xf32>
    %268 = vector.shape_cast %267 : vector<1x4x256xf32> to vector<4x256xf32>
    %269 = arith.mulf %268, %266 : vector<4x256xf32>
    %270 = arith.addf %260, %269 : vector<4x256xf32>
    %271 = arith.addf %270, %265 : vector<4x256xf32>
    %272 = vector.extract_strided_slice %271 {offsets = [0, 0], sizes = [2, 256], strides = [1, 1]} : vector<4x256xf32> to vector<2x256xf32>
    %273 = vector.extract_strided_slice %271 {offsets = [2, 0], sizes = [2, 256], strides = [1, 1]} : vector<4x256xf32> to vector<2x256xf32>
    %274 = arith.addf %272, %273 : vector<2x256xf32>
    %275 = arith.negf %274 : vector<2x256xf32>
    %276 = math.exp %275 : vector<2x256xf32>
    %cst_121 = arith.constant 1.000000e+00 : f32
    %277 = vector.broadcast %cst_121 : f32 to vector<2x256xf32>
    %278 = arith.addf %277, %276 : vector<2x256xf32>
    %279 = arith.divf %277, %278 : vector<2x256xf32>
    %c0_122 = arith.constant 0 : index
    %c0_123 = arith.constant 0 : index
    %c0_124 = arith.constant 0 : index
    %280 = vector.load %arg5[%c0_122, %c0_123, %c0_124] : memref<2x32x256xf32, #tpu.memory_space<vmem>>, vector<2x32x256xf32>
    %281 = vector.shape_cast %279 : vector<2x256xf32> to vector<2x1x256xf32>
    %282 = vector.broadcast %281 : vector<2x1x256xf32> to vector<2x32x256xf32>
    %283 = arith.mulf %280, %282 : vector<2x32x256xf32>
    %c0_125 = arith.constant 0 : index
    %c0_126 = arith.constant 0 : index
    %c0_127 = arith.constant 0 : index
    %284 = vector.load %arg5[%c0_125, %c0_126, %c0_127] : memref<2x32x256xf32, #tpu.memory_space<vmem>>, vector<2x32x256xf32>
    tpu.vector_store %arg5[%c0_125, %c0_126, %c0_127], %283 {strides = array<i32>} : memref<2x32x256xf32, #tpu.memory_space<vmem>>, vector<2x32x256xf32>,
    return
  }
  func.func @transform_0(%arg0: i32) -> (i32, i32, i32) {
    %c0_i32 = arith.constant 0 : i32
    %c0_i32_0 = arith.constant 0 : i32
    %c0_i32_1 = arith.constant 0 : i32
    return %arg0, %c0_i32, %c0_i32_0 : i32, i32, i32
  }
  func.func @transform_1(%arg0: i32) -> (i32, i32) {
    %c0_i32 = arith.constant 0 : i32
    %c0_i32_0 = arith.constant 0 : i32
    %c0_i32_1 = arith.constant 0 : i32
    return %c0_i32, %c0_i32_0 : i32, i32
  }
  func.func @transform_2(%arg0: i32) -> (i32, i32) {
    %c0_i32 = arith.constant 0 : i32
    %c0_i32_0 = arith.constant 0 : i32
    %c0_i32_1 = arith.constant 0 : i32
    return %c0_i32, %c0_i32_0 : i32, i32
  }
  func.func @transform_3(%arg0: i32) -> (i32, i32, i32) {
    %c0_i32 = arith.constant 0 : i32
    %c0_i32_0 = arith.constant 0 : i32
    %c0_i32_1 = arith.constant 0 : i32
    %c0_i32_2 = arith.constant 0 : i32
    return %c0_i32, %c0_i32_0, %c0_i32_1 : i32, i32, i32
  }
  func.func @transform_4(%arg0: i32) -> (i32, i32, i32) {
    %c0_i32 = arith.constant 0 : i32
    %c0_i32_0 = arith.constant 0 : i32
    %c0_i32_1 = arith.constant 0 : i32
    return %arg0, %c0_i32, %c0_i32_0 : i32, i32, i32
  }
}

</mosaic_0001>

<bundles_post_ra>
// kernel: tpu_custom_call.1
= control target key start
LH: loop header
LB: loop body
LE: loop exit
PB: predicated region body
PF: predicated region fallthrough
CT: control target
= control target key end

     0   :  { %9 = vsyncpa [#allocation3], 0  ;;  %s2655_s0 = inlined_call_operand.hbm [shape: f32[4,32,256], index: 0, kind: input, shape index: {}]   ;;  %s2656_s1 = inlined_call_operand.vmem [shape: f32[32,2], index: 1, kind: input, shape index: {}]   ;;  %s2657_s2 = inlined_call_operand.vmem [shape: f32[2,32], index: 2, kind: input, shape index: {}]   ;;  %s2658_s3 = inlined_call_operand.hbm [shape: f32[49,4,256], index: 3, kind: input, shape index: {}]   ;;  %s2659_s4 = inlined_call_operand.hbm [shape: f32[4,32,256], index: 4, kind: output, shape index: {}]  }
   0x1   :  { %11 = vsyncpa [#allocation3 + $0x1], 0 }
   0x2   :  { %12 = vsyncpa [#allocation6], 0 }
   0x3   :  { %13 = vsyncpa [#allocation4], 0 }
   0x4   :  { %15 = vsyncpa [#allocation4 + $0x1], 0  ;;  %s1989_s15 = smov 0   ;;  %s1991_s16 = smov 0  }
   0x5   :  { %s1993_s17 = smov 0   ;;  %s1995_s18 = smov 0  }
   0x6 LB: > { %s2010_s19 = sadd.s32 4294967295, %s1902_s18   ;;  %s1595_s20 = sadd.s32 4294967294, %s1902_s18   ;;  %s1902_s18 = sphi %s1995_s18, %s2679_s18   ;;  %s1898_s17 = sphi %s1993_s17, %s2678_s17   ;;  %s1894_s16 = sphi %s1991_s16, %s2677_s16   ;;  %s1890_s15 = sphi %s1989_s15, %s2676_s15  }
   0x7   : > { %p41_p0 = scmp.ne.s32.totalorder %s1894_s16, %s1890_s15  ;;  %p2660_p1 = scmp.eq.s32.totalorder %s2010_s19, 0 }
   0x8   : > { %p134_p3 = scmp.eq.s32.totalorder %s1595_s20, 1  ;;  %p1596_p5 = scmp.ge.s32.totalorder %s1902_s18, 1 }
   0x9   : > { %p2019_p4 = por %p2660_p1, %p41_p0  ;;  %p141_p7 = scmp.lt.s32.totalorder %s1902_s18, 3 }
   0xa   : > { %p2024_p6 = por %p134_p3, %p41_p0  ;;  %s1904_s24 = smov [#allocation5]  }
   0xb   : > { %s2663_s21 = scalar_select %p2019_p4, 1, 0 }
   0xc   : > { %s2664_s22 = scalar_select %p2024_p6, 1, 0 }
   0xd   : > { %p2029_p8 = pnand %p1596_p5, %p141_p7  ;;  %s159_s25 = sshll.u32 %s1904_s24, 4  ;;  %s2033_s25 = int_to_ptr.vmem [resolvable:$true] %s159_s25 }
   0xe   : > { %s2045_s27 = sadd.s32 1, %s1902_s18   ;;  %s28_s28 = sadd.s32 1, %s1898_s17 }
   0xf   : > { %s2665_s23 = scalar_select %p2029_p8, 1, 0 }
  0x10   : > { %p1660_p9 = pneg %p2029_p8  ;;  %s25_s29 = ssub.s32 %s1902_s18, %s2045_s27 }
  0x11   : > { %s1774_s6 = scalar_lea.hbm %s2658_s3, 6272 }
  0x12   : > { %p2040_p11 = pnand %p1660_p9, %p2660_p1  ;;  %p1775_p12 = scmp.ne.s32.totalorder %s2658_s3, %s1774_s6 }
  0x13   : > { %p1781_p5 = scmp.lt.u32.totalorder %s1774_s6, %s2658_s3 }
  0x14   : > { %p1776_p13 = pneg %p2040_p11 }
  0x16   : > { %p1777_p0 = pnand %p1776_p13, %p1775_p12 }
  0x18   : > { %p1778_p3 = pneg %p1777_p0 }
  0x1a   : > { %p1783_p7 = pnand %p1781_p5, %p1778_p3 }
  0x1c   : > { %1786 = shalt.err (!%p1783_p7)
}
  0x1d   : > { %s1787_s11 = scalar_lea.vmem %s2033_s25, 6272  ;;  %p1795_p2 = scmp.lt.s32.totalorder %s2033_s25, %s2033_s25 }
  0x1e   : > { %p1788_p9 = scmp.ne.s32.totalorder %s2033_s25, %s1787_s11  ;;  %p1796_p6 = scmp.lt.s32.totalorder %s1787_s11, %s1787_s11 }
  0x20   : > { %p1790_p10 = pnand %p1788_p9, %p1776_p13  ;;  %p1797_p4 = por %p1796_p6, %p1795_p2 }
  0x22   : > { %p1791_p1 = pneg %p1790_p10 }
  0x24   : > { %p1798_p8 = pnand %p1797_p4, %p1791_p1 }
  0x26   : > { %1801 = shalt.err (!%p1798_p8)
}
  0x27   : > { %s1905_s12 = smov 128   ;;  %s1906_s13 = smov 8  }
  0x28   : > { %1663 = dma.hbm_to_vmem [thread:$0]  (!%p2040_p11), %s2658_s3, 6272, %s2033_s25, [#allocation6], %s1905_s12, %s1905_s12, %s1906_s13  }
  0x29   : > { %p26_p2 = scmp.eq.s32.totalorder %s25_s29, 0  ;;  %p35_p1 = scmp.ne.s32.totalorder %s1898_s17, %s1894_s16 }
  0x2a   : > { %p36_p4 = scmp.eq.s32.totalorder %s1902_s18, 0  ;;  %p1673_p6 = scmp.lt.s32.totalorder %s1902_s18, 2 }
  0x2b   : > { %s2076_s24 = scalar_select %p26_p2, %s1898_s17, %s28_s28  }
  0x2c   : > { %p37_p8 = por %p36_p4, %p35_p1  ;;  %p2667_p10 = scmp.eq.s32.totalorder %s2010_s19, 1 }
  0x2d   : > { %s173_s5 = sand.u32 1, %s1898_s17   ;;  %s1620_s6 = sshll.u32 %s1902_s18, 11 }
  0x2e   : > { %p2080_p12 = por %p2667_p10, %p35_p1  ;;  %s1599_s7 = sshll.u32 %s173_s5, 7 }
  0x2f   : > { %s2089_s9 = scalar_lea.hbm %s2655_s0, %s1620_s6  ;;  %s177_s25 = scalar_lea.vmem [#allocation2], %s1599_s7 }
  0x30   : > { %s185_s28 = sshll.u32 %s177_s25, 4  ;;  %p2091_p11 = pnand %p1673_p6, %p37_p8  ;;  %s2095_s28 = int_to_ptr.vmem [resolvable:$true] %s185_s28 }
  0x31   : > { %s2097_s10 = scalar_lea.sflag [#allocation3], %s173_s5  ;;  %s1802_s11 = scalar_lea.hbm %s2089_s9, 2048 }
  0x32   : > { %p1803_p13 = scmp.ne.s32.totalorder %s2089_s9, %s1802_s11  ;;  %p1804_p0 = pneg %p2091_p11 }
  0x33   : > { %s1807_s14 = scalar_lea.hbm %s2655_s0, 4096  ;;  %p1808_p7 = scmp.lt.u32.totalorder %s2089_s9, %s2655_s0 }
  0x34   : > { %p1805_p3 = pnand %p1804_p0, %p1803_p13  ;;  %p1809_p9 = scmp.lt.u32.totalorder %s1807_s14, %s1802_s11 }
  0x35   : > { %p1811_p1 = scmp.lt.u32.totalorder %s1802_s11, %s2089_s9 }
  0x36   : > { %p1806_p5 = pneg %p1805_p3  ;;  %p1810_p2 = por %p1809_p9, %p1808_p7 }
  0x38   : > { %p1812_p4 = por %p1811_p1, %p1810_p2 }
  0x3a   : > { %p1813_p6 = pnand %p1812_p4, %p1806_p5 }
  0x3c   : > { %1816 = shalt.err (!%p1813_p6)
}
  0x3d   : > { %s1817_s5 = scalar_lea.vmem %s2095_s28, 2048  ;;  %s1907_s7 = smov [#allocation2]  }
  0x3e   : > { %p1818_p8 = scmp.ne.s32.totalorder %s2095_s28, %s1817_s5  ;;  %s1822_s26 = sshll.u32 %s1907_s7, 4  ;;  %s1823_s26 = int_to_ptr.vmem [resolvable:$false] %s1822_s26 }
  0x3f   : > { %s1824_s8 = scalar_lea.vmem %s1823_s26, 4096  ;;  %p1825_p3 = scmp.lt.s32.totalorder %s2095_s28, %s1823_s26 }
  0x40   : > { %p1820_p10 = pnand %p1818_p8, %p1804_p0  ;;  %p1826_p7 = scmp.lt.s32.totalorder %s1824_s8, %s1817_s5 }
  0x42   : > { %p1821_p13 = pneg %p1820_p10  ;;  %p1827_p9 = por %p1826_p7, %p1825_p3 }
  0x44   : > { %p1828_p2 = pnand %p1827_p9, %p1821_p13 }
  0x46   : > { %1831 = shalt.err (!%p1828_p2)
}
  0x47   : > { %s1908_s25 = smov 256   ;;  %s1909_s11 = smov 16  }
  0x48   : > { %1667 = dma.hbm_to_vmem [thread:$0]  (!%p2091_p11), %s2089_s9, 2048, %s2095_s28, %s2097_s10, %s1908_s25, %s1908_s25, %s1909_s11  }
  0x49   : > { %p2670_p0 = scmp.ne.s32.totalorder %s2665_s23, 0 }
  0x4a   : > { %s2128_s12 = sand.u32 (!%p2670_p0), 1, %s1894_s16   ;;  %p2671_p5 = scmp.ne.s32.totalorder (!%p2670_p0), %s2663_s21, 0 }
  0x4b   : > { %197 = sbr.rel (%p2670_p0) target bundleno = 1228 (0x4cc), region = 36  ;;  %s1604_s13 = sshll.u32 (!%p2670_p0), %s2128_s12, 7 }
  0x4c   : > { %s200_s14 = scalar_lea.sflag (!%p2670_p0), [#allocation3], %s2128_s12  ;;  %s203_s20 = scalar_lea.vmem (!%p2670_p0), [#allocation2], %s1604_s13 }
  0x52   : > { %1877 = dma.done.wait (%p2671_p5), %s200_s14, 2048  }
  0x53   : > { %1879 = vsyncadd (%p2671_p5), %s200_s14, 4294965248  ;;  %p2672_p11 = scmp.eq.s32.totalorder %s2010_s19, 0 }
  0x55   : > { %1881 = dma.done.wait (%p2672_p11), [#allocation6], 6272   ;;  %p2673_p1 = pmov %p2672_p11 }
  0x56   : > { %v2142_v0 = vld [vmem:[%s203_s20 + $0x40] sm:$0xff]  ;;  %v2144_v1 = vld [vmem:[%s203_s20 + $0x48] sm:$0xff]  ;;  %v2152_v5 = vld [vmem:[%s203_s20 + $0x50] sm:$0xff]  ;;  %v1910_v27 = vmov 0.0|0.0   ;;  %vm1911_vm0 = vmmov 0   ;;  %v1912_v31 = vmov 0.0   ;;  %v294_v32 = vlaneseq }
  0x57   : > { %1883 = vsyncadd (%p2673_p1), [#allocation6], 4294961024  ;;  %v2146_v2 = vld [vmem:[%s203_s20] sm:$0xff]  ;;  %v262_v3 = vadd.f32 %v2144_v1, %v2142_v0  ;;  %v2150_v4 = vld [vmem:[%s203_s20 + $0x8] sm:$0xff]  ;;  %1646 = vmatprep.subr.bf16.mxu0 %v1910_v27  ;;  %1638 = vmatprep.mubr.msk.f32.mxu0 %vm1911_vm0, %v1912_v31  ;;  %vm305_vm1 = vcmask 130112   ;;  %vm312_vm2 = vcmask 195712  }
  0x58   : > { %v2154_v6 = vld [vmem:[%s203_s20 + $0x58] sm:$0xff]  ;;  %v250_v7 = vadd.f32 %v2150_v4, %v2146_v2  ;;  %v2158_v8 = vld [vmem:[%s203_s20 + $0x10] sm:$0xff]  ;;  %v2166_v12 = vld [vmem:[%s203_s20 + $0x60] sm:$0xff]  ;;  %1641 = vmatprep.subr.mxu1 %v1912_v31  ;;  %1643 = vmatprep.mubr.msk.f32.mxu1 %vm1911_vm0, %v1912_v31  ;;  %v2202_v34 = vand.u32 127, %v294_v32  ;;  %v2206_v39 = vshrl.u32 %v294_v32, 7  ;;  %vm319_vm3 = vcmask 261312  }
  0x59   : > { %v2160_v9 = vld [vmem:[%s203_s20 + $0x18] sm:$0xff]  ;;  %263 = vadd.xlane.f32.xlu1 %v262_v3  ;;  %v265_v10 = vadd.f32 %v2154_v6, %v2152_v5  ;;  %v2168_v13 = vld [vmem:[%s203_s20 + $0x68] sm:$0xff]  ;;  %v2170_v14 = vld [vmem:[%s203_s20 + $0x20] sm:$0xff]  ;;  %vm340_vm4 = vcmask 1041409   ;;  %vm342_vm5 = vcmask 261120   ;;  %vm421_vm6 = vcmask 1041408  }
  0x5a   : > { %251 = vadd.xlane.f32.xlu0 %v250_v7  ;;  %v253_v11 = vadd.f32 %v2160_v9, %v2158_v8  ;;  %v2172_v15 = vld [vmem:[%s203_s20 + $0x28] sm:$0xff]  ;;  %v268_v16 = vadd.f32 %v2168_v13, %v2166_v12  ;;  %v2178_v18 = vld [vmem:[%s203_s20 + $0x70] sm:$0xff]  ;;  %v2180_v19 = vld [vmem:[%s203_s20 + $0x78] sm:$0xff]  ;;  %v300_v36 = vadd.s32 4294967288, %v2202_v34  ;;  %v307_v38 = vadd.s32 4294967280, %v2202_v34  ;;  %s1913_s8 = smov 51  }
  0x5b   : > { %v256_v17 = vadd.f32 %v2172_v15, %v2170_v14  ;;  %v2182_v20 = vld [vmem:[%s203_s20 + $0x30] sm:$0xff]  ;;  %v2184_v21 = vld [vmem:[%s203_s20 + $0x38] sm:$0xff]  ;;  %v271_v22 = vadd.f32 %v2180_v19, %v2178_v18  ;;  %v282_v24 = vld [vmem:[%s2656_s1] sm:$0xff]  ;;  %v314_v43 = vadd.s32 4294967272, %v2202_v34  ;;  %v298_v47 = vsub.s32 %v2202_v34, %v2206_v39  ;;  %s1914_s25 = smov 50   ;;  %s1915_s11 = smov 49  }
  0x5c   : > { %v259_v23 = vadd.f32 %v2184_v21, %v2182_v20  ;;  %v283_v25 = vld [vmem:[%s2656_s1 + $0x8] sm:$0xff]  ;;  %v284_v28 = vld [vmem:[%s2656_s1 + $0x10] sm:$0xff]  ;;  %v285_v29 = vld [vmem:[%s2656_s1 + $0x18] sm:$0xff]  ;;  %v303_v41 = vsub.s32 %v300_v36, %v2206_v39  ;;  %v310_v45 = vsub.s32 %v307_v38, %v2206_v39  ;;  %vm417_vm7 = vcmask 15360   ;;  %s1916_s14 = smov 48   ;;  %s1917_s20 = smov 47  }
  0x5d   : > { %266 = vadd.xlane.f32.xlu1 %v265_v10  ;;  %v1647_v26 = vpack.c.bf16 %v283_v25, %v282_v24  ;;  %v1650_v30 = vpack.c.bf16 %v285_v29, %v284_v28  ;;  %v317_v54 = vsub.s32 %v314_v43, %v2206_v39  ;;  %v416_v25 = vld [vmem:[%s2657_s2] sm:$0x3]  ;;  %v2224_v38 = vsub.s32 1, %v2206_v39  ;;  %s1918_s21 = smov 46   ;;  %s1919_s23 = smov 45  }
  0x5e   : > { %254 = vadd.xlane.f32.xlu0 %v253_v11  ;;  %1642 = vmatpush3.msk.msra.mxu1 %vm421_vm6, %v416_v25  ;;  %vm676_vm8 = vcmask 1043459   ;;  %s1920_s9 = smov 35   ;;  %s1921_s28 = smov 34   ;;  %vm687_vm9 = vcmp.lt.s32.totalorder %v2202_v34, 51  ;;  %vm701_vm10 = vcmp.lt.s32.totalorder %v2202_v34, 50  ;;  %vm716_vm11 = vcmp.lt.s32.totalorder %v2202_v34, 49 }
  0x5f   : > { %1648 = vmatpush3.bf16.msra.mxu0 %v1647_v26  ;;  %s1922_s29 = smov 33   ;;  %s1923_s10 = smov 32   ;;  %vm731_vm12 = vcmp.lt.s32.totalorder %v2202_v34, 48  ;;  %vm746_vm13 = vcmp.lt.s32.totalorder %v2202_v34, 47  ;;  %vm761_vm14 = vcmp.lt.s32.totalorder %v2202_v34, 46  ;;  %vm776_vm15 = vcmp.lt.s32.totalorder %v2202_v34, 45 }
  0x60   : > { %1649 = vmatprep.subr.bf16.mxu0 %v1910_v27  ;;  %s1924_s6 = smov 31   ;;  %s1925_s5 = smov 30   ;;  %vm791_vm0 = vcmp.lt.s32.totalorder %v2202_v34, 35 }
  0x61   : > { %269 = vadd.xlane.f32.xlu1 %v268_v16  ;;  %s1926_s7 = smov 29   ;;  %s1927_s26 = smov 19  }
  0x62   : > { %257 = vadd.xlane.f32.xlu0 %v256_v17 }
  0x63   : > { %1651 = vmatpush3.bf16.msra.mxu0 %v1650_v30 }
  0x65   : > { %272 = vadd.xlane.f32.xlu1 %v271_v22 }
  0x66   : > { %260 = vadd.xlane.f32.xlu0 %v259_v23 }
  0xe6   : > { %v264_v33 = vpop.xlane.xlu1 %263 }
  0xe7   : > { %v252_v35 = vpop.xlane.xlu0 %251  ;;  %v278_v48 = vmul.f32 0.00390625, %v264_v33 }
  0xe8   : > { %v274_v51 = vmul.f32 0.00390625, %v252_v35  ;;  %v2220_v35 = vsub.s32 0, %v2206_v39 }
  0xe9   : > { %v324_v58 = vrot.slane %v278_v48, %v298_v47 }
  0xea   : > { %v267_v37 = vpop.xlane.xlu1 %266  ;;  %v299_v62 = vrot.slane %v274_v51, %v298_v47 }
  0xeb   : > { %v255_v40 = vpop.xlane.xlu0 %254  ;;  %v279_v42 = vmul.f32 0.00390625, %v267_v37 }
  0xec   : > { %v275_v44 = vmul.f32 0.00390625, %v255_v40 }
  0xed   : > { %v328_v53 = vrot.slane %v279_v42, %v303_v41 }
  0xee   : > { %v270_v46 = vpop.xlane.xlu1 %269  ;;  %v304_v55 = vrot.slane %v275_v44, %v303_v41 }
  0xef   : > { %v280_v49 = vmul.f32 0.00390625, %v270_v46  ;;  %v258_v50 = vpop.xlane.xlu0 %257  ;;  %v329_v3 = vsel %vm305_vm1, %v328_v53, %v324_v58 }
  0xf0   : > { %v276_v52 = vmul.f32 0.00390625, %v258_v50  ;;  %v306_v10 = vsel %vm305_vm1, %v304_v55, %v299_v62  ;;  %vm806_vm1 = vcmp.lt.s32.totalorder %v2202_v34, 34 }
  0xf1   : > { %v333_v56 = vrot.slane %v280_v49, %v310_v45 }
  0xf2   : > { %v273_v57 = vpop.xlane.xlu1 %272  ;;  %v311_v59 = vrot.slane %v276_v52, %v310_v45 }
  0xf3   : > { %v281_v60 = vmul.f32 0.00390625, %v273_v57  ;;  %v261_v61 = vpop.xlane.xlu0 %260  ;;  %v334_v16 = vsel %vm312_vm2, %v333_v56, %v329_v3 }
  0xf4   : > { %v277_v63 = vmul.f32 0.00390625, %v261_v61  ;;  %v313_v17 = vsel %vm312_vm2, %v311_v59, %v306_v10  ;;  %vm821_vm2 = vcmp.lt.s32.totalorder %v2202_v34, 33 }
  0xf5   : > { %v338_v7 = vrot.slane %v281_v60, %v317_v54 }
  0xf6   : > { %v318_v11 = vrot.slane %v277_v63, %v317_v54 }
  0xf7   : > { %v339_v22 = vsel %vm319_vm3, %v338_v7, %v334_v16 }
  0xf8   : > { %v320_v23 = vsel %vm319_vm3, %v318_v11, %v313_v17  ;;  %vm836_vm3 = vcmp.lt.s32.totalorder %v2202_v34, 32 }
  0xf9   : > { %v341_v24 = vsel %vm340_vm4, %v339_v22, %v320_v23 }
  0xfa   : > { %1639 = vmatmul.mubr.msk.f32.vlgmr.msra.gmra.mrb[0].mxu0 %vm342_vm5, %v341_v24  ;;  %vm866_vm5 = vcmp.lt.s32.totalorder %v2202_v34, 30 }
 0x1cd   : > { %v411_v26 = vpop.f32.mrb[0].mxu0 }
 0x1ce   : > { %v415_v27 = vmax.f32 %v411_v26, 0.0  ;;  %v1640_v28 = vpop.f32.mrb[1].mxu0 }
 0x1d0   : > { %1644 = vmatmul.mubr.msk.f32.vlgmr.msra.gmra.mrb[0].mxu1 %vm417_vm7, %v415_v27  ;;  %vm896_vm7 = vcmp.lt.s32.totalorder %v2202_v34, 19 }
 0x2a3   : > { %v491_v29 = vpop.f32.mrb[0].mxu1 }
 0x2a4   : > { %v1610_v30 = vmul.f32 -1.442695, %v491_v29  ;;  %v1645_v31 = vpop.f32.mrb[1].mxu1 }
 0x2a6   : > { %1766 = vpow2.f32 %v1610_v30 }
 0x2b0   : > { %v1767_v32 = vpop.eup %1766 }
 0x2b1   : > { %v498_v33 = vadd.f32 1.0, %v1767_v32 }
 0x2b3   : > { %1768 = vrcp.f32 %v498_v33 }
 0x2bd   : > { %v1769_v36 = vpop.eup %1768 }
 0x2be   : > { %v504_v37 = vrot.slane %v1769_v36, %v2220_v35  ;;  %v523_v40 = vrot.slane %v1769_v36, %v2224_v38 }
 0x2c0   : > { %510 = vbcast.lane.b32.xlu1 %v504_v37, 264  ;;  %506 = vbcast.lane.b32.xlu0 %v504_v37, 256 }
 0x2c4   : > { %525 = vbcast.lane.b32.xlu1 %v523_v40, 256  ;;  %514 = vbcast.lane.b32.xlu0 %v504_v37, 272 }
 0x2c8   : > { %529 = vbcast.lane.b32.xlu1 %v523_v40, 264  ;;  %518 = vbcast.lane.b32.xlu0 %v504_v37, 280 }
 0x2cc   : > { %533 = vbcast.lane.b32.xlu1 %v523_v40, 272 }
 0x2d0   : > { %537 = vbcast.lane.b32.xlu1 %v523_v40, 280 }
 0x332   : > { %v511_v41 = vpop.permute.xlu1 %510  ;;  %v507_v42 = vpop.permute.xlu0 %506 }
 0x333   : > { %v2228_v43 = vmul.f32 %v511_v41, %v2158_v8  ;;  %v2231_v44 = vmul.f32 %v511_v41, %v2160_v9  ;;  %v2234_v45 = vmul.f32 %v507_v42, %v2146_v2  ;;  %v2237_v46 = vmul.f32 %v507_v42, %v2150_v4 }
 0x335   : > { %v587_v8 = vmax.f32 %v2234_v45, %v2228_v43  ;;  %v596_v9 = vmax.f32 %v2237_v46, %v2231_v44  ;;  %v623_v2 = vadd.f32 %v2228_v43, %v2234_v45  ;;  %v632_v4 = vadd.f32 %v2231_v44, %v2237_v46 }
 0x336   : > { %v526_v47 = vpop.permute.xlu1 %525  ;;  %v515_v48 = vpop.permute.xlu0 %514 }
 0x337   : > { %v2240_v49 = vmul.f32 %v515_v48, %v2170_v14  ;;  %v2243_v50 = vmul.f32 %v515_v48, %v2172_v15 }
 0x339   : > { %v588_v55 = vmax.f32 %v587_v8, %v2240_v49  ;;  %v597_v56 = vmax.f32 %v596_v9, %v2243_v50  ;;  %v624_v57 = vadd.f32 %v623_v2, %v2240_v49  ;;  %v633_v58 = vadd.f32 %v632_v4, %v2243_v50 }
 0x33a   : > { %v530_v51 = vpop.permute.xlu1 %529  ;;  %v519_v52 = vpop.permute.xlu0 %518 }
 0x33b   : > { %v2254_v14 = vmul.f32 %v530_v51, %v2152_v5  ;;  %v2257_v15 = vmul.f32 %v530_v51, %v2154_v6  ;;  %v2260_v53 = vmul.f32 %v519_v52, %v2182_v20  ;;  %v2263_v54 = vmul.f32 %v519_v52, %v2184_v21 }
 0x33c   : > { %v2270_v5 = vmul.f32 %v526_v47, %v2142_v0  ;;  %v2273_v6 = vmul.f32 %v526_v47, %v2144_v1 }
 0x33d   : > { %v589_v20 = vmax.f32 %v588_v55, %v2260_v53  ;;  %v598_v59 = vmax.f32 %v597_v56, %v2263_v54  ;;  %v625_v21 = vadd.f32 %v624_v57, %v2260_v53  ;;  %v634_v60 = vadd.f32 %v633_v58, %v2263_v54 }
 0x33e   : > { %v534_v61 = vpop.permute.xlu1 %533  ;;  %v605_v62 = vmax.f32 %v2270_v5, %v2254_v14  ;;  %v614_v63 = vmax.f32 %v2273_v6, %v2257_v15  ;;  %v641_v16 = vadd.f32 %v2254_v14, %v2270_v5  ;;  %v650_v17 = vadd.f32 %v2257_v15, %v2273_v6 }
 0x33f   : > { %v2284_v0 = vmul.f32 %v534_v61, %v2166_v12  ;;  %v2287_v1 = vmul.f32 %v534_v61, %v2168_v13  ;;  %v590_v3 = vrot.slane %v589_v20, 4  ;;  %v599_v7 = vrot.slane %v598_v59, 4 }
 0x340   : > { %v626_v10 = vrot.slane %v625_v21, 4  ;;  %v635_v11 = vrot.slane %v634_v60, 4 }
 0x341   : > { %v606_v22 = vmax.f32 %v605_v62, %v2284_v0  ;;  %v615_v23 = vmax.f32 %v614_v63, %v2287_v1  ;;  %v591_v24 = vmax.f32 %v589_v20, %v590_v3  ;;  %v600_v12 = vmax.f32 %v598_v59, %v599_v7 }
 0x342   : > { %v627_v25 = vadd.f32 %v626_v10, %v625_v21  ;;  %v636_v26 = vadd.f32 %v635_v11, %v634_v60  ;;  %v538_v13 = vpop.permute.xlu1 %537  ;;  %v642_v27 = vadd.f32 %v641_v16, %v2284_v0  ;;  %v651_v28 = vadd.f32 %v650_v17, %v2287_v1 }
 0x343   : > { %v2298_v29 = vmul.f32 %v538_v13, %v2178_v18  ;;  %v2301_v30 = vmul.f32 %v538_v13, %v2180_v19  ;;  %v592_v41 = vrot.slane %v591_v24, 2  ;;  %v601_v42 = vrot.slane %v600_v12, 2 }
 0x344   : > { %v628_v31 = vrot.slane %v627_v25, 2  ;;  %v637_v32 = vrot.slane %v636_v26, 2 }
 0x345   : > { %v607_v33 = vmax.f32 %v606_v22, %v2298_v29  ;;  %v616_v36 = vmax.f32 %v615_v23, %v2301_v30  ;;  %v643_v37 = vadd.f32 %v642_v27, %v2298_v29  ;;  %v652_v40 = vadd.f32 %v651_v28, %v2301_v30 }
 0x346   : > { %v629_v47 = vadd.f32 %v628_v31, %v627_v25  ;;  %v638_v48 = vadd.f32 %v637_v32, %v636_v26  ;;  %v593_v55 = vmax.f32 %v591_v24, %v592_v41  ;;  %v602_v56 = vmax.f32 %v600_v12, %v601_v42 }
 0x347   : > { %v608_v8 = vrot.slane %v607_v33, 4  ;;  %v617_v18 = vrot.slane %v616_v36, 4  ;;  %v644_v9 = vrot.slane %v643_v37, 4  ;;  %v653_v2 = vrot.slane %v652_v40, 4 }
 0x348   : > { %v630_v57 = vrot.slane %v629_v47, 1  ;;  %v639_v58 = vrot.slane %v638_v48, 1  ;;  %v594_v7 = vrot.slane %v593_v55, 1  ;;  %v603_v10 = vrot.slane %v602_v56, 1 }
 0x349   : > { %v609_v19 = vmax.f32 %v607_v33, %v608_v8  ;;  %v618_v4 = vmax.f32 %v616_v36, %v617_v18  ;;  %v645_v51 = vadd.f32 %v644_v9, %v643_v37  ;;  %v654_v52 = vadd.f32 %v653_v2, %v652_v40 }
 0x34a   : > { %v631_v11 = vadd.f32 %v630_v57, %v629_v47  ;;  %v640_v16 = vadd.f32 %v639_v58, %v638_v48  ;;  %v595_v27 = vmax.f32 %v593_v55, %v594_v7  ;;  %v604_v28 = vmax.f32 %v602_v56, %v603_v10  ;;  %v705_v10 = vld [vmem:[#allocation5 + $0x8] sm:$0xff] }
 0x34b   : > { %v610_v20 = vrot.slane %v609_v19, 2  ;;  %v619_v59 = vrot.slane %v618_v4, 2  ;;  %v646_v21 = vrot.slane %v645_v51, 2  ;;  %v655_v60 = vrot.slane %v654_v52, 2 }
 0x34c   : > { %v660_v31 = vmul.f32 0.03125, %v631_v11  ;;  %v661_v32 = vmul.f32 0.03125, %v640_v16  ;;  %v735_v11 = vld [vmem:[#allocation5 + $0x18] sm:$0xff] }
 0x34d   : > { %v611_v61 = vmax.f32 %v609_v19, %v610_v20  ;;  %v620_v62 = vmax.f32 %v618_v4, %v619_v59  ;;  %v647_v63 = vadd.f32 %v646_v21, %v645_v51  ;;  %v656_v3 = vadd.f32 %v655_v60, %v654_v52  ;;  %v690_v20 = vld [vmem:[#allocation5] sm:$0xff]  ;;  %v720_v59 = vld [vmem:[#allocation5 + $0x10] sm:$0xff] }
 0x34f   : > { %v612_v17 = vrot.slane %v611_v61, 1  ;;  %v621_v22 = vrot.slane %v620_v62, 1  ;;  %v648_v23 = vrot.slane %v647_v63, 1  ;;  %v657_v25 = vrot.slane %v656_v3, 1 }
 0x351   : > { %v613_v24 = vmax.f32 %v611_v61, %v612_v17  ;;  %v622_v12 = vmax.f32 %v620_v62, %v621_v22  ;;  %v649_v26 = vadd.f32 %v648_v23, %v647_v63  ;;  %v658_v13 = vadd.f32 %v657_v25, %v656_v3 }
 0x353   : > { %v662_v33 = vmul.f32 0.03125, %v649_v26  ;;  %v663_v36 = vmul.f32 0.03125, %v658_v13  ;;  %v668_v37 = vsel %vm340_vm4, %v613_v24, %v595_v27  ;;  %v669_v40 = vsel %vm340_vm4, %v622_v12, %v604_v28  ;;  %v750_v13 = vld [vmem:[#allocation5 + $0x20] sm:$0xff] }
 0x354   : > { %vm851_vm4 = vcmp.lt.s32.totalorder %v2202_v34, 31 }
 0x355   : > { %v677_v41 = vsel %vm676_vm8, %v662_v33, %v660_v31  ;;  %v678_v42 = vsel %vm676_vm8, %v663_v36, %v661_v32  ;;  %vm911_vm8 = vcmp.lt.s32.totalorder %v2202_v34, 18 }
 0x356   : > { %v2310_v47 = vsel %vm421_vm6, %v668_v37, %v677_v41  ;;  %v2313_v48 = vsel %vm421_vm6, %v669_v40, %v678_v42  ;;  %v765_v40 = vld [vmem:[#allocation5 + $0x28] sm:$0xff]  ;;  %vm881_vm6 = vcmp.lt.s32.totalorder %v2202_v34, 29 }
 0x357   : > { %685 = vrot.lane.b32.xlu1 %v2313_v48, %s1913_s8  ;;  %683 = vrot.lane.b32.xlu0 %v2310_v47, %s1913_s8  ;;  %s1928_s8 = smov 18  }
 0x35b   : > { %699 = vrot.lane.b32.xlu1 %v2313_v48, %s1914_s25  ;;  %697 = vrot.lane.b32.xlu0 %v2310_v47, %s1914_s25  ;;  %s1929_s25 = smov 17  }
 0x35f   : > { %714 = vrot.lane.b32.xlu1 %v2313_v48, %s1915_s11  ;;  %712 = vrot.lane.b32.xlu0 %v2310_v47, %s1915_s11  ;;  %s1930_s11 = smov 16  }
 0x363   : > { %729 = vrot.lane.b32.xlu1 %v2313_v48, %s1916_s14  ;;  %727 = vrot.lane.b32.xlu0 %v2310_v47, %s1916_s14  ;;  %s1931_s14 = smov 15  }
 0x367   : > { %744 = vrot.lane.b32.xlu1 %v2313_v48, %s1917_s20  ;;  %742 = vrot.lane.b32.xlu0 %v2310_v47, %s1917_s20  ;;  %s1932_s20 = smov 14  }
 0x36b   : > { %759 = vrot.lane.b32.xlu1 %v2313_v48, %s1918_s21  ;;  %757 = vrot.lane.b32.xlu0 %v2310_v47, %s1918_s21  ;;  %s1933_s21 = smov 13  }
 0x36f   : > { %774 = vrot.lane.b32.xlu1 %v2313_v48, %s1919_s23  ;;  %772 = vrot.lane.b32.xlu0 %v2310_v47, %s1919_s23  ;;  %s1934_s23 = smov 3  }
 0x373   : > { %789 = vrot.lane.b32.xlu1 %v2313_v48, %s1920_s9  ;;  %787 = vrot.lane.b32.xlu0 %v2310_v47, %s1920_s9  ;;  %s1935_s9 = smov 2  }
 0x377   : > { %804 = vrot.lane.b32.xlu1 %v2313_v48, %s1921_s28  ;;  %802 = vrot.lane.b32.xlu0 %v2310_v47, %s1921_s28  ;;  %s1936_s28 = smov 1  }
 0x37b   : > { %819 = vrot.lane.b32.xlu1 %v2313_v48, %s1922_s29  ;;  %817 = vrot.lane.b32.xlu0 %v2310_v47, %s1922_s29  ;;  %s1937_s29 = smov 127  }
 0x37f   : > { %834 = vrot.lane.b32.xlu1 %v2313_v48, %s1923_s10  ;;  %832 = vrot.lane.b32.xlu0 %v2310_v47, %s1923_s10  ;;  %s1938_s10 = smov 126  }
 0x383   : > { %849 = vrot.lane.b32.xlu1 %v2313_v48, %s1924_s6  ;;  %847 = vrot.lane.b32.xlu0 %v2310_v47, %s1924_s6  ;;  %s1939_s6 = smov 125  }
 0x387   : > { %864 = vrot.lane.b32.xlu1 %v2313_v48, %s1925_s5  ;;  %862 = vrot.lane.b32.xlu0 %v2310_v47, %s1925_s5  ;;  %s1940_s5 = smov 115  }
 0x38b   : > { %879 = vrot.lane.b32.xlu1 %v2313_v48, %s1926_s7  ;;  %877 = vrot.lane.b32.xlu0 %v2310_v47, %s1926_s7  ;;  %s1941_s7 = smov 114  }
 0x38f   : > { %894 = vrot.lane.b32.xlu1 %v2313_v48, %s1927_s26  ;;  %892 = vrot.lane.b32.xlu0 %v2310_v47, %s1927_s26  ;;  %s1942_s26 = smov 113  }
 0x393   : > { %909 = vrot.lane.b32.xlu1 %v2313_v48, %s1928_s8  ;;  %907 = vrot.lane.b32.xlu0 %v2310_v47, %s1928_s8  ;;  %s1943_s8 = smov 112  }
 0x397   : > { %924 = vrot.lane.b32.xlu1 %v2313_v48, %s1929_s25  ;;  %922 = vrot.lane.b32.xlu0 %v2310_v47, %s1929_s25  ;;  %s1944_s25 = smov 111  }
 0x39b   : > { %939 = vrot.lane.b32.xlu1 %v2313_v48, %s1930_s11  ;;  %937 = vrot.lane.b32.xlu0 %v2310_v47, %s1930_s11 }
 0x39f   : > { %954 = vrot.lane.b32.xlu1 %v2313_v48, %s1931_s14  ;;  %952 = vrot.lane.b32.xlu0 %v2310_v47, %s1931_s14  ;;  %s1945_s14 = smov 110  }
 0x3a3   : > { %969 = vrot.lane.b32.xlu1 %v2313_v48, %s1932_s20  ;;  %967 = vrot.lane.b32.xlu0 %v2310_v47, %s1932_s20  ;;  %s1946_s20 = smov 109  }
 0x3a7   : > { %984 = vrot.lane.b32.xlu1 %v2313_v48, %s1933_s21  ;;  %982 = vrot.lane.b32.xlu0 %v2310_v47, %s1933_s21  ;;  %s1947_s21 = smov 99  }
 0x3ab   : > { %999 = vrot.lane.b32.xlu1 %v2313_v48, %s1934_s23  ;;  %997 = vrot.lane.b32.xlu0 %v2310_v47, %s1934_s23  ;;  %s1948_s23 = smov 98  }
 0x3af   : > { %1014 = vrot.lane.b32.xlu1 %v2313_v48, %s1935_s9  ;;  %1012 = vrot.lane.b32.xlu0 %v2310_v47, %s1935_s9  ;;  %s1949_s9 = smov 97  }
 0x3b3   : > { %1029 = vrot.lane.b32.xlu1 %v2313_v48, %s1936_s28  ;;  %1027 = vrot.lane.b32.xlu0 %v2310_v47, %s1936_s28  ;;  %s1950_s28 = smov 96  }
 0x3b7   : > { %1052 = vrot.lane.b32.xlu1 %v2313_v48, %s1937_s29  ;;  %1050 = vrot.lane.b32.xlu0 %v2310_v47, %s1937_s29  ;;  %s1951_s29 = smov 95  }
 0x3bb   : > { %1067 = vrot.lane.b32.xlu1 %v2313_v48, %s1938_s10  ;;  %1065 = vrot.lane.b32.xlu0 %v2310_v47, %s1938_s10  ;;  %s1952_s10 = smov 94  }
 0x3bf   : > { %1082 = vrot.lane.b32.xlu1 %v2313_v48, %s1939_s6  ;;  %1080 = vrot.lane.b32.xlu0 %v2310_v47, %s1939_s6  ;;  %s1953_s6 = smov 93  }
 0x3c3   : > { %1097 = vrot.lane.b32.xlu1 %v2313_v48, %s1940_s5  ;;  %1095 = vrot.lane.b32.xlu0 %v2310_v47, %s1940_s5  ;;  %s1954_s5 = smov 83  }
 0x3c7   : > { %1112 = vrot.lane.b32.xlu1 %v2313_v48, %s1941_s7  ;;  %1110 = vrot.lane.b32.xlu0 %v2310_v47, %s1941_s7  ;;  %s1955_s7 = smov 82  }
 0x3c9   : > { %v686_v8 = vpop.permute.xlu1 %685  ;;  %v684_v18 = vpop.permute.xlu0 %683 }
 0x3ca   : > { %v688_v9 = vsel %vm687_vm9, %v684_v18, %v686_v8  ;;  %v689_v2 = vsel %vm687_vm9, %v686_v8, %v684_v18  ;;  %vm926_vm9 = vcmp.lt.s32.totalorder %v2202_v34, 17 }
 0x3cb   : > { %v693_v19 = vcombine.low %v689_v2, %v688_v9  ;;  %1127 = vrot.lane.b32.xlu1 %v2313_v48, %s1942_s26  ;;  %1125 = vrot.lane.b32.xlu0 %v2310_v47, %s1942_s26  ;;  %s1956_s26 = smov 81  }
 0x3cd   : > { %v700_v4 = vpop.permute.xlu1 %699  ;;  %v698_v51 = vpop.permute.xlu0 %697  ;;  %v695_v62 = vmul.f32 %v693_v19, %v690_v20 }
 0x3ce   : > { %v702_v52 = vsel %vm701_vm10, %v698_v51, %v700_v4  ;;  %v703_v55 = vsel %vm701_vm10, %v700_v4, %v698_v51  ;;  %v780_v4 = vld [vmem:[#allocation5 + $0x30] sm:$0xff]  ;;  %vm941_vm10 = vcmp.lt.s32.totalorder %v2202_v34, 16 }
 0x3cf   : > { %v708_v56 = vcombine.low %v703_v55, %v702_v52  ;;  %1142 = vrot.lane.b32.xlu1 %v2313_v48, %s1943_s8  ;;  %1140 = vrot.lane.b32.xlu0 %v2310_v47, %s1943_s8  ;;  %s1957_s8 = smov 80  }
 0x3d1   : > { %v715_v57 = vpop.permute.xlu1 %714  ;;  %v713_v58 = vpop.permute.xlu0 %712  ;;  %v710_v25 = vmul.f32 %v708_v56, %v705_v10  ;;  %v810_v10 = vld [vmem:[#allocation5 + $0x40] sm:$0xff] }
 0x3d2   : > { %v717_v21 = vsel %vm716_vm11, %v713_v58, %v715_v57  ;;  %v718_v60 = vsel %vm716_vm11, %v715_v57, %v713_v58  ;;  %vm956_vm11 = vcmp.lt.s32.totalorder %v2202_v34, 15 }
 0x3d3   : > { %v723_v61 = vcombine.low %v718_v60, %v717_v21  ;;  %1157 = vrot.lane.b32.xlu1 %v2313_v48, %s1944_s25  ;;  %1155 = vrot.lane.b32.xlu0 %v2310_v47, %s1944_s25  ;;  %s1958_s25 = smov 79  }
 0x3d5   : > { %v725_v63 = vmul.f32 %v723_v61, %v720_v59  ;;  %v730_v3 = vpop.permute.xlu1 %729  ;;  %v728_v7 = vpop.permute.xlu0 %727  ;;  %v795_v59 = vld [vmem:[#allocation5 + $0x38] sm:$0xff] }
 0x3d6   : > { %v732_v16 = vsel %vm731_vm12, %v728_v7, %v730_v3  ;;  %v733_v17 = vsel %vm731_vm12, %v730_v3, %v728_v7  ;;  %vm971_vm12 = vcmp.lt.s32.totalorder %v2202_v34, 14 }
 0x3d7   : > { %v726_v22 = vadd.f32 %v725_v63, %v695_v62  ;;  %v738_v23 = vcombine.low %v733_v17, %v732_v16  ;;  %1172 = vrot.lane.b32.xlu1 %v2313_v48, %s1945_s14  ;;  %1170 = vrot.lane.b32.xlu0 %v2310_v47, %s1945_s14  ;;  %s1959_s14 = smov 78  }
 0x3d9   : > { %v740_v24 = vmul.f32 %v738_v23, %v735_v11  ;;  %v745_v12 = vpop.permute.xlu1 %744  ;;  %v743_v26 = vpop.permute.xlu0 %742 }
 0x3da   : > { %v747_v27 = vsel %vm746_vm13, %v743_v26, %v745_v12  ;;  %v748_v28 = vsel %vm746_vm13, %v745_v12, %v743_v26  ;;  %v825_v12 = vld [vmem:[#allocation5 + $0x48] sm:$0xff]  ;;  %vm986_vm13 = vcmp.lt.s32.totalorder %v2202_v34, 13 }
 0x3db   : > { %v741_v31 = vadd.f32 %v740_v24, %v710_v25  ;;  %v753_v32 = vcombine.low %v748_v28, %v747_v27  ;;  %1187 = vrot.lane.b32.xlu1 %v2313_v48, %s1946_s20  ;;  %1185 = vrot.lane.b32.xlu0 %v2310_v47, %s1946_s20  ;;  %s1960_s20 = smov 77  }
 0x3dd   : > { %v755_v33 = vmul.f32 %v753_v32, %v750_v13  ;;  %v760_v36 = vpop.permute.xlu1 %759  ;;  %v758_v37 = vpop.permute.xlu0 %757 }
 0x3de   : > { %v762_v41 = vsel %vm761_vm14, %v758_v37, %v760_v36  ;;  %v763_v42 = vsel %vm761_vm14, %v760_v36, %v758_v37  ;;  %v840_v36 = vld [vmem:[#allocation5 + $0x50] sm:$0xff]  ;;  %vm1001_vm14 = vcmp.lt.s32.totalorder %v2202_v34, 3 }
 0x3df   : > { %v756_v8 = vadd.f32 %v755_v33, %v726_v22  ;;  %v768_v18 = vcombine.low %v763_v42, %v762_v41  ;;  %1202 = vrot.lane.b32.xlu1 %v2313_v48, %s1947_s21  ;;  %1200 = vrot.lane.b32.xlu0 %v2310_v47, %s1947_s21  ;;  %s1622_s21 = sshll.u32 %s2010_s19, 11 }
 0x3e1   : > { %v770_v9 = vmul.f32 %v768_v18, %v765_v40  ;;  %v775_v2 = vpop.permute.xlu1 %774  ;;  %v773_v19 = vpop.permute.xlu0 %772 }
 0x3e2   : > { %v777_v51 = vsel %vm776_vm15, %v773_v19, %v775_v2  ;;  %v778_v52 = vsel %vm776_vm15, %v775_v2, %v773_v19  ;;  %v855_v2 = vld [vmem:[#allocation5 + $0x58] sm:$0xff]  ;;  %vm1016_vm15 = vcmp.lt.s32.totalorder %v2202_v34, 2 }
 0x3e3   : > { %v771_v55 = vadd.f32 %v770_v9, %v741_v31  ;;  %v783_v56 = vcombine.low %v778_v52, %v777_v51  ;;  %1217 = vrot.lane.b32.xlu1 %v2313_v48, %s1948_s23  ;;  %1215 = vrot.lane.b32.xlu0 %v2310_v47, %s1948_s23  ;;  %s231_s23 = scalar_lea.vmem [#allocation7], %s1604_s13 }
 0x3e5   : > { %v785_v57 = vmul.f32 %v783_v56, %v780_v4  ;;  %v790_v58 = vpop.permute.xlu1 %789  ;;  %v788_v20 = vpop.permute.xlu0 %787 }
 0x3e6   : > { %v792_v21 = vsel %vm791_vm0, %v788_v20, %v790_v58  ;;  %v793_v60 = vsel %vm791_vm0, %v790_v58, %v788_v20  ;;  %v870_v58 = vld [vmem:[#allocation5 + $0x60] sm:$0xff]  ;;  %vm1031_vm0 = vcmp.lt.s32.totalorder %v2202_v34, 1 }
 0x3e7   : > { %v786_v61 = vadd.f32 %v785_v57, %v756_v8  ;;  %v798_v62 = vcombine.low %v793_v60, %v792_v21  ;;  %1232 = vrot.lane.b32.xlu1 %v2313_v48, %s1949_s9  ;;  %1230 = vrot.lane.b32.xlu0 %v2310_v47, %s1949_s9  ;;  %s1512_s9 = sshll.u32 %s231_s23, 4  ;;  %s2610_s9 = int_to_ptr.vmem [resolvable:$true] %s1512_s9 }
 0x3e9   : > { %v800_v63 = vmul.f32 %v798_v62, %v795_v59  ;;  %v805_v3 = vpop.permute.xlu1 %804  ;;  %v803_v7 = vpop.permute.xlu0 %802 }
 0x3ea   : > { %v807_v11 = vsel %vm806_vm1, %v803_v7, %v805_v3  ;;  %v808_v16 = vsel %vm806_vm1, %v805_v3, %v803_v7  ;;  %v885_v3 = vld [vmem:[#allocation5 + $0x68] sm:$0xff]  ;;  %vm1054_vm1 = vcmp.lt.s32.totalorder %v2202_v34, 127 }
 0x3eb   : > { %v801_v17 = vadd.f32 %v800_v63, %v771_v55  ;;  %v813_v22 = vcombine.low %v808_v16, %v807_v11  ;;  %1247 = vrot.lane.b32.xlu1 %v2313_v48, %s1950_s28  ;;  %1245 = vrot.lane.b32.xlu0 %v2310_v47, %s1950_s28  ;;  %s2606_s28 = scalar_lea.hbm %s2659_s4, %s1622_s21 }
 0x3ed   : > { %v815_v23 = vmul.f32 %v813_v22, %v810_v10  ;;  %v820_v25 = vpop.permute.xlu1 %819  ;;  %v818_v24 = vpop.permute.xlu0 %817 }
 0x3ee   : > { %v822_v26 = vsel %vm821_vm2, %v818_v24, %v820_v25  ;;  %v823_v13 = vsel %vm821_vm2, %v820_v25, %v818_v24  ;;  %v900_v25 = vld [vmem:[#allocation5 + $0x70] sm:$0xff]  ;;  %vm1069_vm2 = vcmp.lt.s32.totalorder %v2202_v34, 126 }
 0x3ef   : > { %v816_v27 = vadd.f32 %v815_v23, %v786_v61  ;;  %v828_v28 = vcombine.low %v823_v13, %v822_v26  ;;  %1262 = vrot.lane.b32.xlu1 %v2313_v48, %s1951_s29  ;;  %1260 = vrot.lane.b32.xlu0 %v2310_v47, %s1951_s29  ;;  %s1498_s29 = scalar_lea.sflag [#allocation4], %s2128_s12 }
 0x3f1   : > { %v830_v31 = vmul.f32 %v828_v28, %v825_v12  ;;  %v835_v32 = vpop.permute.xlu1 %834  ;;  %v833_v33 = vpop.permute.xlu0 %832 }
 0x3f2   : > { %v837_v37 = vsel %vm836_vm3, %v833_v33, %v835_v32  ;;  %v838_v40 = vsel %vm836_vm3, %v835_v32, %v833_v33  ;;  %v915_v32 = vld [vmem:[#allocation5 + $0x78] sm:$0xff]  ;;  %vm1084_vm3 = vcmp.lt.s32.totalorder %v2202_v34, 125 }
 0x3f3   : > { %v831_v41 = vadd.f32 %v830_v31, %v801_v17  ;;  %v843_v42 = vcombine.low %v838_v40, %v837_v37  ;;  %1277 = vrot.lane.b32.xlu1 %v2313_v48, %s1952_s10  ;;  %1275 = vrot.lane.b32.xlu0 %v2310_v47, %s1952_s10  ;;  %s1832_s10 = scalar_lea.vmem %s2610_s9, 2048 }
 0x3f4   : > { %p1833_p4 = scmp.ne.s32.totalorder %s2610_s9, %s1832_s10 }
 0x3f5   : > { %v845_v8 = vmul.f32 %v843_v42, %v840_v36  ;;  %v850_v18 = vpop.permute.xlu1 %849  ;;  %v848_v9 = vpop.permute.xlu0 %847 }
 0x3f6   : > { %v852_v19 = vsel %vm851_vm4, %v848_v9, %v850_v18  ;;  %v853_v4 = vsel %vm851_vm4, %v850_v18, %v848_v9  ;;  %v930_v18 = vld [vmem:[#allocation5 + $0x80] sm:$0xff]  ;;  %vm1099_vm4 = vcmp.lt.s32.totalorder %v2202_v34, 115  ;;  %p1834_p6 = pnand %p1833_p4, %p2080_p12 }
 0x3f7   : > { %v846_v51 = vadd.f32 %v845_v8, %v816_v27  ;;  %v858_v52 = vcombine.low %v853_v4, %v852_v19  ;;  %1292 = vrot.lane.b32.xlu1 %v2313_v48, %s1953_s6  ;;  %1290 = vrot.lane.b32.xlu0 %v2310_v47, %s1953_s6  ;;  %s1962_s6 = smov [#allocation7]  }
 0x3f8   : > { %p1835_p8 = pneg %p1834_p6 }
 0x3f9   : > { %v860_v55 = vmul.f32 %v858_v52, %v855_v2  ;;  %v865_v56 = vpop.permute.xlu1 %864  ;;  %v863_v57 = vpop.permute.xlu0 %862 }
 0x3fa   : > { %v867_v20 = vsel %vm866_vm5, %v863_v57, %v865_v56  ;;  %v868_v59 = vsel %vm866_vm5, %v865_v56, %v863_v57  ;;  %v945_v56 = vld [vmem:[#allocation5 + $0x88] sm:$0xff]  ;;  %vm1114_vm5 = vcmp.lt.s32.totalorder %v2202_v34, 114 }
 0x3fb   : > { %v861_v21 = vadd.f32 %v860_v55, %v831_v41  ;;  %v873_v60 = vcombine.low %v868_v59, %v867_v20  ;;  %1307 = vrot.lane.b32.xlu1 %v2313_v48, %s1954_s5  ;;  %1305 = vrot.lane.b32.xlu0 %v2310_v47, %s1954_s5  ;;  %s1836_s5 = sshll.u32 %s1962_s6, 4  ;;  %s1837_s5 = int_to_ptr.vmem [resolvable:$false] %s1836_s5 }
 0x3fc   : > { %p1839_p10 = scmp.lt.s32.totalorder %s2610_s9, %s1837_s5 }
 0x3fd   : > { %v875_v61 = vmul.f32 %v873_v60, %v870_v58  ;;  %v880_v62 = vpop.permute.xlu1 %879  ;;  %v878_v63 = vpop.permute.xlu0 %877 }
 0x3fe   : > { %v882_v7 = vsel %vm881_vm6, %v878_v63, %v880_v62  ;;  %v883_v10 = vsel %vm881_vm6, %v880_v62, %v878_v63  ;;  %v960_v62 = vld [vmem:[#allocation5 + $0x90] sm:$0xff]  ;;  %vm1129_vm6 = vcmp.lt.s32.totalorder %v2202_v34, 113 }
 0x3ff   : > { %v876_v11 = vadd.f32 %v875_v61, %v846_v51  ;;  %v888_v16 = vcombine.low %v883_v10, %v882_v7  ;;  %1322 = vrot.lane.b32.xlu1 %v2313_v48, %s1955_s7  ;;  %1320 = vrot.lane.b32.xlu0 %v2310_v47, %s1955_s7  ;;  %s1838_s7 = scalar_lea.vmem %s1837_s5, 4096 }
 0x400   : > { %p1840_p13 = scmp.lt.s32.totalorder %s1838_s7, %s1832_s10 }
 0x401   : > { %v890_v17 = vmul.f32 %v888_v16, %v885_v3  ;;  %v895_v22 = vpop.permute.xlu1 %894  ;;  %v893_v23 = vpop.permute.xlu0 %892 }
 0x402   : > { %v897_v24 = vsel %vm896_vm7, %v893_v23, %v895_v22  ;;  %v898_v12 = vsel %vm896_vm7, %v895_v22, %v893_v23  ;;  %v975_v22 = vld [vmem:[#allocation5 + $0x98] sm:$0xff]  ;;  %vm1144_vm7 = vcmp.lt.s32.totalorder %v2202_v34, 112  ;;  %p1841_p3 = por %p1840_p13, %p1839_p10 }
 0x403   : > { %v891_v26 = vadd.f32 %v890_v17, %v861_v21  ;;  %v903_v13 = vcombine.low %v898_v12, %v897_v24  ;;  %1337 = vrot.lane.b32.xlu1 %v2313_v48, %s1956_s26  ;;  %1335 = vrot.lane.b32.xlu0 %v2310_v47, %s1956_s26 }
 0x404   : > { %p1842_p7 = pnand %p1841_p3, %p1835_p8 }
 0x405   : > { %v905_v27 = vmul.f32 %v903_v13, %v900_v25  ;;  %v910_v28 = vpop.permute.xlu1 %909  ;;  %v908_v31 = vpop.permute.xlu0 %907 }
 0x406   : > { %v912_v33 = vsel %vm911_vm8, %v908_v31, %v910_v28  ;;  %v913_v36 = vsel %vm911_vm8, %v910_v28, %v908_v31  ;;  %v990_v28 = vld [vmem:[#allocation5 + $0xa0] sm:$0xff]  ;;  %vm1159_vm8 = vcmp.lt.s32.totalorder %v2202_v34, 111 }
 0x407   : > { %v906_v37 = vadd.f32 %v905_v27, %v876_v11  ;;  %v918_v40 = vcombine.low %v913_v36, %v912_v33  ;;  %1352 = vrot.lane.b32.xlu1 %v2313_v48, %s1957_s8  ;;  %1350 = vrot.lane.b32.xlu0 %v2310_v47, %s1957_s8 }
 0x409   : > { %v920_v41 = vmul.f32 %v918_v40, %v915_v32  ;;  %v925_v42 = vpop.permute.xlu1 %924  ;;  %v923_v8 = vpop.permute.xlu0 %922 }
 0x40a   : > { %v927_v9 = vsel %vm926_vm9, %v923_v8, %v925_v42  ;;  %v928_v2 = vsel %vm926_vm9, %v925_v42, %v923_v8  ;;  %v1005_v42 = vld [vmem:[#allocation5 + $0xa8] sm:$0xff]  ;;  %vm1174_vm9 = vcmp.lt.s32.totalorder %v2202_v34, 110 }
 0x40b   : > { %v921_v19 = vadd.f32 %v920_v41, %v891_v26  ;;  %v933_v4 = vcombine.low %v928_v2, %v927_v9  ;;  %1367 = vrot.lane.b32.xlu1 %v2313_v48, %s1958_s25  ;;  %1365 = vrot.lane.b32.xlu0 %v2310_v47, %s1958_s25 }
 0x40d   : > { %v935_v51 = vmul.f32 %v933_v4, %v930_v18  ;;  %v940_v52 = vpop.permute.xlu1 %939  ;;  %v938_v55 = vpop.permute.xlu0 %937 }
 0x40e   : > { %v942_v57 = vsel %vm941_vm10, %v938_v55, %v940_v52  ;;  %v943_v58 = vsel %vm941_vm10, %v940_v52, %v938_v55  ;;  %v1020_v52 = vld [vmem:[#allocation5 + $0xb0] sm:$0xff]  ;;  %vm1189_vm10 = vcmp.lt.s32.totalorder %v2202_v34, 109 }
 0x40f   : > { %v936_v20 = vadd.f32 %v935_v51, %v906_v37  ;;  %v948_v59 = vcombine.low %v943_v58, %v942_v57  ;;  %1382 = vrot.lane.b32.xlu1 %v2313_v48, %s1959_s14  ;;  %1380 = vrot.lane.b32.xlu0 %v2310_v47, %s1959_s14 }
 0x411   : > { %v950_v21 = vmul.f32 %v948_v59, %v945_v56  ;;  %v955_v60 = vpop.permute.xlu1 %954  ;;  %v953_v61 = vpop.permute.xlu0 %952 }
 0x412   : > { %v957_v63 = vsel %vm956_vm11, %v953_v61, %v955_v60  ;;  %v958_v3 = vsel %vm956_vm11, %v955_v60, %v953_v61  ;;  %v1035_v60 = vld [vmem:[#allocation5 + $0xb8] sm:$0xff]  ;;  %vm1204_vm11 = vcmp.lt.s32.totalorder %v2202_v34, 99 }
 0x413   : > { %v951_v7 = vadd.f32 %v950_v21, %v921_v19  ;;  %v963_v10 = vcombine.low %v958_v3, %v957_v63  ;;  %1397 = vrot.lane.b32.xlu1 %v2313_v48, %s1960_s20  ;;  %1395 = vrot.lane.b32.xlu0 %v2310_v47, %s1960_s20 }
 0x415   : > { %v965_v11 = vmul.f32 %v963_v10, %v960_v62  ;;  %v970_v16 = vpop.permute.xlu1 %969  ;;  %v968_v17 = vpop.permute.xlu0 %967 }
 0x416   : > { %v972_v23 = vsel %vm971_vm12, %v968_v17, %v970_v16  ;;  %v973_v25 = vsel %vm971_vm12, %v970_v16, %v968_v17  ;;  %v1058_v16 = vld [vmem:[#allocation5 + $0xc8] sm:$0xff]  ;;  %vm1219_vm12 = vcmp.lt.s32.totalorder %v2202_v34, 98 }
 0x417   : > { %v966_v24 = vadd.f32 %v965_v11, %v936_v20  ;;  %v978_v12 = vcombine.low %v973_v25, %v972_v23 }
 0x419   : > { %v980_v26 = vmul.f32 %v978_v12, %v975_v22  ;;  %v985_v13 = vpop.permute.xlu1 %984  ;;  %v983_v27 = vpop.permute.xlu0 %982  ;;  %v1043_v12 = vld [vmem:[#allocation5 + $0xc0] sm:$0xff] }
 0x41a   : > { %v987_v31 = vsel %vm986_vm13, %v983_v27, %v985_v13  ;;  %v988_v32 = vsel %vm986_vm13, %v985_v13, %v983_v27  ;;  %vm1234_vm13 = vcmp.lt.s32.totalorder %v2202_v34, 97 }
 0x41b   : > { %v981_v33 = vadd.f32 %v980_v26, %v951_v7  ;;  %v993_v36 = vcombine.low %v988_v32, %v987_v31 }
 0x41d   : > { %v995_v37 = vmul.f32 %v993_v36, %v990_v28  ;;  %v1000_v40 = vpop.permute.xlu1 %999  ;;  %v998_v41 = vpop.permute.xlu0 %997  ;;  %v1073_v28 = vld [vmem:[#allocation5 + $0xd0] sm:$0xff] }
 0x41e   : > { %v1002_v8 = vsel %vm1001_vm14, %v998_v41, %v1000_v40  ;;  %v1003_v18 = vsel %vm1001_vm14, %v1000_v40, %v998_v41  ;;  %vm1249_vm14 = vcmp.lt.s32.totalorder %v2202_v34, 96 }
 0x41f   : > { %v996_v9 = vadd.f32 %v995_v37, %v966_v24  ;;  %v1008_v2 = vcombine.low %v1003_v18, %v1002_v8  ;;  %v1046_v24 = vcombine.low %v2310_v47, %v2313_v48  ;;  %v1088_v18 = vld [vmem:[#allocation5 + $0xd8] sm:$0xff] }
 0x421   : > { %v1010_v19 = vmul.f32 %v1008_v2, %v1005_v42  ;;  %v1015_v4 = vpop.permute.xlu1 %1014  ;;  %v1013_v51 = vpop.permute.xlu0 %1012  ;;  %v1048_v36 = vmul.f32 %v1046_v24, %v1043_v12 }
 0x422   : > { %v1017_v55 = vsel %vm1016_vm15, %v1013_v51, %v1015_v4  ;;  %v1018_v56 = vsel %vm1016_vm15, %v1015_v4, %v1013_v51  ;;  %vm1264_vm15 = vcmp.lt.s32.totalorder %v2202_v34, 95 }
 0x423   : > { %v1011_v57 = vadd.f32 %v1010_v19, %v981_v33  ;;  %v1023_v58 = vcombine.low %v1018_v56, %v1017_v55 }
 0x425   : > { %v1025_v20 = vmul.f32 %v1023_v58, %v1020_v52  ;;  %v1030_v59 = vpop.permute.xlu1 %1029  ;;  %v1028_v21 = vpop.permute.xlu0 %1027 }
 0x426   : > { %v1032_v61 = vsel %vm1031_vm0, %v1028_v21, %v1030_v59  ;;  %v1033_v62 = vsel %vm1031_vm0, %v1030_v59, %v1028_v21  ;;  %vm1279_vm0 = vcmp.lt.s32.totalorder %v2202_v34, 94 }
 0x427   : > { %v1026_v63 = vadd.f32 %v1025_v20, %v996_v9  ;;  %v1038_v3 = vcombine.low %v1033_v62, %v1032_v61 }
 0x429   : > { %v1040_v7 = vmul.f32 %v1038_v3, %v1035_v60  ;;  %v1053_v10 = vpop.permute.xlu1 %1052  ;;  %v1051_v11 = vpop.permute.xlu0 %1050  ;;  %v1049_v40 = vadd.f32 %v1048_v36, %v1026_v63 }
 0x42a   : > { %v1055_v17 = vsel %vm1054_vm1, %v1051_v11, %v1053_v10  ;;  %v1056_v22 = vsel %vm1054_vm1, %v1053_v10, %v1051_v11  ;;  %vm1294_vm1 = vcmp.lt.s32.totalorder %v2202_v34, 93 }
 0x42b   : > { %v1041_v23 = vadd.f32 %v1040_v7, %v1011_v57  ;;  %v1061_v25 = vcombine.low %v1055_v17, %v1056_v22 }
 0x42d   : > { %v1063_v26 = vmul.f32 %v1061_v25, %v1058_v16  ;;  %v1068_v13 = vpop.permute.xlu1 %1067  ;;  %v1066_v27 = vpop.permute.xlu0 %1065 }
 0x42e   : > { %v1070_v31 = vsel %vm1069_vm2, %v1066_v27, %v1068_v13  ;;  %v1071_v32 = vsel %vm1069_vm2, %v1068_v13, %v1066_v27  ;;  %vm1309_vm2 = vcmp.lt.s32.totalorder %v2202_v34, 83 }
 0x42f   : > { %v1064_v33 = vadd.f32 %v1063_v26, %v1041_v23  ;;  %v1076_v37 = vcombine.low %v1070_v31, %v1071_v32 }
 0x431   : > { %v1078_v41 = vmul.f32 %v1076_v37, %v1073_v28  ;;  %v1083_v42 = vpop.permute.xlu1 %1082  ;;  %v1081_v8 = vpop.permute.xlu0 %1080 }
 0x432   : > { %v1085_v9 = vsel %vm1084_vm3, %v1081_v8, %v1083_v42  ;;  %v1086_v2 = vsel %vm1084_vm3, %v1083_v42, %v1081_v8  ;;  %vm1324_vm3 = vcmp.lt.s32.totalorder %v2202_v34, 82 }
 0x433   : > { %v2442_v47 = vadd.f32 %v1078_v41, %v1049_v40  ;;  %v1091_v48 = vcombine.low %v1085_v9, %v1086_v2  ;;  %v1103_v9 = vld [vmem:[#allocation5 + $0xe0] sm:$0xff]  ;;  %v1118_v2 = vld [vmem:[#allocation5 + $0xe8] sm:$0xff] }
 0x435   : > { %v1093_v19 = vmul.f32 %v1091_v48, %v1088_v18  ;;  %v1098_v4 = vpop.permute.xlu1 %1097  ;;  %v1096_v51 = vpop.permute.xlu0 %1095 }
 0x436   : > { %v1100_v27 = vsel %vm1099_vm4, %v1096_v51, %v1098_v4  ;;  %v1101_v28 = vsel %vm1099_vm4, %v1098_v4, %v1096_v51  ;;  %vm1339_vm4 = vcmp.lt.s32.totalorder %v2202_v34, 81 }
 0x437   : > { %v2444_v52 = vadd.f32 %v1093_v19, %v1064_v33  ;;  %v1106_v8 = vcombine.low %v1100_v27, %v1101_v28  ;;  %v1148_v28 = vld [vmem:[#allocation5 + $0xf8] sm:$0xff] }
 0x439   : > { %v1113_v55 = vpop.permute.xlu1 %1112  ;;  %v1111_v56 = vpop.permute.xlu0 %1110 }
 0x43a   : > { %v1115_v31 = vsel %vm1114_vm5, %v1111_v56, %v1113_v55  ;;  %v1116_v32 = vsel %vm1114_vm5, %v1113_v55, %v1111_v56  ;;  %vm1354_vm5 = vcmp.lt.s32.totalorder %v2202_v34, 80 }
 0x43b   : > { %v1121_v18 = vcombine.low %v1115_v31, %v1116_v32  ;;  %v1163_v32 = vld [vmem:[#allocation5 + $0x100] sm:$0xff] }
 0x43d   : > { %v1128_v57 = vpop.permute.xlu1 %1127  ;;  %v1126_v58 = vpop.permute.xlu0 %1125  ;;  %v1123_v27 = vmul.f32 %v1121_v18, %v1118_v2  ;;  %v1193_v18 = vld [vmem:[#allocation5 + $0x110] sm:$0xff] }
 0x43e   : > { %v1130_v37 = vsel %vm1129_vm6, %v1126_v58, %v1128_v57  ;;  %v1131_v40 = vsel %vm1129_vm6, %v1128_v57, %v1126_v58  ;;  %v1133_v57 = vld [vmem:[#allocation5 + $0xf0] sm:$0xff]  ;;  %vm1369_vm6 = vcmp.lt.s32.totalorder %v2202_v34, 79 }
 0x43f   : > { %v1136_v4 = vcombine.low %v1130_v37, %v1131_v40  ;;  %v1124_v2 = vadd.f32 %v1123_v27, %v2444_v52  ;;  %v1223_v27 = vld [vmem:[#allocation5 + $0x120] sm:$0xff] }
 0x441   : > { %v1143_v20 = vpop.permute.xlu1 %1142  ;;  %v1141_v59 = vpop.permute.xlu0 %1140 }
 0x442   : > { %v1145_v41 = vsel %vm1144_vm7, %v1141_v59, %v1143_v20  ;;  %v1146_v42 = vsel %vm1144_vm7, %v1143_v20, %v1141_v59  ;;  %vm1384_vm7 = vcmp.lt.s32.totalorder %v2202_v34, 78 }
 0x443   : > { %v1151_v51 = vcombine.low %v1145_v41, %v1146_v42 }
 0x445   : > { %v1158_v21 = vpop.permute.xlu1 %1157  ;;  %v1156_v60 = vpop.permute.xlu0 %1155  ;;  %v1153_v42 = vmul.f32 %v1151_v51, %v1148_v28 }
 0x446   : > { %v1160_v48 = vsel %vm1159_vm8, %v1156_v60, %v1158_v21  ;;  %v1161_v19 = vsel %vm1159_vm8, %v1158_v21, %v1156_v60  ;;  %v1108_v60 = vmul.f32 %v1106_v8, %v1103_v9  ;;  %v1178_v8 = vld [vmem:[#allocation5 + $0x108] sm:$0xff]  ;;  %vm1399_vm8 = vcmp.lt.s32.totalorder %v2202_v34, 77 }
 0x447   : > { %v1166_v31 = vcombine.low %v1160_v48, %v1161_v19 }
 0x449   : > { %v1173_v61 = vpop.permute.xlu1 %1172  ;;  %v1171_v62 = vpop.permute.xlu0 %1170  ;;  %v1168_v48 = vmul.f32 %v1166_v31, %v1163_v32  ;;  %v1238_v32 = vld [vmem:[#allocation5 + $0x128] sm:$0xff] }
 0x44a   : > { %v1175_v58 = vsel %vm1174_vm9, %v1171_v62, %v1173_v61  ;;  %v1176_v20 = vsel %vm1174_vm9, %v1173_v61, %v1171_v62  ;;  %v1138_v61 = vmul.f32 %v1136_v4, %v1133_v57  ;;  %v1208_v4 = vld [vmem:[#allocation5 + $0x118] sm:$0xff] }
 0x44b   : > { %v1181_v62 = vcombine.low %v1175_v58, %v1176_v20 }
 0x44d   : > { %v1188_v63 = vpop.permute.xlu1 %1187  ;;  %v1186_v3 = vpop.permute.xlu0 %1185 }
 0x44e   : > { %v1190_v59 = vsel %vm1189_vm10, %v1186_v3, %v1188_v63  ;;  %v1191_v21 = vsel %vm1189_vm10, %v1188_v63, %v1186_v3 }
 0x44f   : > { %v1196_v63 = vcombine.low %v1190_v59, %v1191_v21 }
 0x451   : > { %v1203_v7 = vpop.permute.xlu1 %1202  ;;  %v1201_v10 = vpop.permute.xlu0 %1200  ;;  %v1198_v58 = vmul.f32 %v1196_v63, %v1193_v18  ;;  %v1268_v18 = vld [vmem:[#allocation5 + $0x138] sm:$0xff] }
 0x452   : > { %v1205_v37 = vsel %vm1204_vm11, %v1201_v10, %v1203_v7  ;;  %v1206_v40 = vsel %vm1204_vm11, %v1203_v7, %v1201_v10  ;;  %v1109_v10 = vadd.f32 %v1108_v60, %v2442_v47  ;;  %v1154_v60 = vadd.f32 %v1153_v42, %v1124_v2 }
 0x453   : > { %v1211_v19 = vcombine.low %v1205_v37, %v1206_v40  ;;  %v1253_v37 = vld [vmem:[#allocation5 + $0x130] sm:$0xff] }
 0x455   : > { %v2446_v11 = vpop.permute.xlu1 %1217  ;;  %v2448_v16 = vpop.permute.xlu0 %1215 }
 0x456   : > { %v1220_v9 = vsel %vm1219_vm12, %v2448_v16, %v2446_v11  ;;  %v1221_v7 = vsel %vm1219_vm12, %v2446_v11, %v2448_v16  ;;  %v1139_v11 = vadd.f32 %v1138_v61, %v1109_v10  ;;  %v1183_v16 = vmul.f32 %v1181_v62, %v1178_v8 }
 0x457   : > { %v1226_v20 = vcombine.low %v1220_v9, %v1221_v7 }
 0x459   : > { %v2450_v17 = vpop.permute.xlu1 %1232  ;;  %v2452_v22 = vpop.permute.xlu0 %1230  ;;  %v1228_v62 = vmul.f32 %v1226_v20, %v1223_v27  ;;  %v1313_v20 = vld [vmem:[#allocation5 + $0x150] sm:$0xff] }
 0x45a   : > { %v1235_v51 = vsel %vm1234_vm13, %v2452_v22, %v2450_v17  ;;  %v1236_v57 = vsel %vm1234_vm13, %v2450_v17, %v2452_v22 }
 0x45b   : > { %v1241_v28 = vcombine.low %v1235_v51, %v1236_v57 }
 0x45d   : > { %v2454_v23 = vpop.permute.xlu1 %1247  ;;  %v2456_v25 = vpop.permute.xlu0 %1245  ;;  %v1243_v2 = vmul.f32 %v1241_v28, %v1238_v32  ;;  %v1343_v28 = vld [vmem:[#allocation5 + $0x160] sm:$0xff] }
 0x45e   : > { %v1250_v47 = vsel %vm1249_vm14, %v2456_v25, %v2454_v23  ;;  %v1251_v52 = vsel %vm1249_vm14, %v2454_v23, %v2456_v25  ;;  %v1169_v23 = vadd.f32 %v1168_v48, %v1139_v11  ;;  %v1213_v25 = vmul.f32 %v1211_v19, %v1208_v4  ;;  %v1283_v4 = vld [vmem:[#allocation5 + $0x140] sm:$0xff] }
 0x45f   : > { %v1256_v31 = vcombine.low %v1250_v47, %v1251_v52 }
 0x461   : > { %v2458_v24 = vpop.permute.xlu1 %1262  ;;  %v2460_v12 = vpop.permute.xlu0 %1260  ;;  %v1258_v48 = vmul.f32 %v1256_v31, %v1253_v37 }
 0x462   : > { %v1265_v17 = vsel %vm1264_vm15, %v2460_v12, %v2458_v24  ;;  %v1266_v22 = vsel %vm1264_vm15, %v2458_v24, %v2460_v12  ;;  %v1184_v24 = vadd.f32 %v1183_v16, %v1154_v60  ;;  %v1199_v12 = vadd.f32 %v1198_v58, %v1169_v23  ;;  %v1298_v58 = vld [vmem:[#allocation5 + $0x148] sm:$0xff] }
 0x463   : > { %v1271_v63 = vcombine.low %v1265_v17, %v1266_v22 }
 0x464   : > { %v1214_v10 = vadd.f32 %v1213_v25, %v1184_v24  ;;  %v1229_v47 = vadd.f32 %v1228_v62, %v1199_v12  ;;  %v1328_v25 = vld [vmem:[#allocation5 + $0x158] sm:$0xff]  ;;  %v1358_v62 = vld [vmem:[#allocation5 + $0x168] sm:$0xff] }
 0x465   : > { %v2464_v26 = vpop.permute.xlu1 %1277  ;;  %v2466_v13 = vpop.permute.xlu0 %1275  ;;  %v1273_v52 = vmul.f32 %v1271_v63, %v1268_v18  ;;  %v1373_v63 = vld [vmem:[#allocation5 + $0x170] sm:$0xff] }
 0x466   : > { %v1280_v40 = vsel %vm1279_vm0, %v2466_v13, %v2464_v26  ;;  %v1281_v61 = vsel %vm1279_vm0, %v2464_v26, %v2466_v13  ;;  %v1244_v22 = vadd.f32 %v1243_v2, %v1214_v10  ;;  %v1259_v23 = vadd.f32 %v1258_v48, %v1229_v47 }
 0x467   : > { %v1286_v19 = vcombine.low %v1280_v40, %v1281_v61 }
 0x468   : > { %v1274_v12 = vadd.f32 %v1273_v52, %v1244_v22 }
 0x469   : > { %v2471_v33 = vpop.permute.xlu1 %1292  ;;  %v2473_v36 = vpop.permute.xlu0 %1290 }
 0x46a   : > { %v1295_v9 = vsel %vm1294_vm1, %v2473_v36, %v2471_v33  ;;  %v1296_v26 = vsel %vm1294_vm1, %v2471_v33, %v2473_v36 }
 0x46d   : > { %v2481_v55 = vpop.permute.xlu1 %1307  ;;  %v2483_v56 = vpop.permute.xlu0 %1305 }
 0x46e   : > { %v1310_v13 = vsel %vm1309_vm2, %v2483_v56, %v2481_v55  ;;  %v1311_v7 = vsel %vm1309_vm2, %v2481_v55, %v2483_v56  ;;  %v1301_v55 = vcombine.low %v1295_v9, %v1296_v26 }
 0x46f   : > { %v1316_v56 = vcombine.low %v1310_v13, %v1311_v7  ;;  %v1388_v7 = vld [vmem:[#allocation5 + $0x178] sm:$0xff] }
 0x470   : > { %v1303_v31 = vmul.f32 %v1301_v55, %v1298_v58 }
 0x471   : > { %v1323_v3 = vpop.permute.xlu1 %1322  ;;  %v1321_v41 = vpop.permute.xlu0 %1320  ;;  %v1318_v32 = vmul.f32 %v1316_v56, %v1313_v20 }
 0x472   : > { %v1325_v51 = vsel %vm1324_vm3, %v1321_v41, %v1323_v3  ;;  %v1326_v33 = vsel %vm1324_vm3, %v1323_v3, %v1321_v41  ;;  %v1304_v10 = vadd.f32 %v1303_v31, %v1274_v12 }
 0x473   : > { %v1331_v27 = vcombine.low %v1325_v51, %v1326_v33  ;;  %v1403_v33 = vld [vmem:[#allocation5 + $0x180] sm:$0xff] }
 0x475   : > { %v1338_v59 = vpop.permute.xlu1 %1337  ;;  %v1336_v21 = vpop.permute.xlu0 %1335  ;;  %v1333_v9 = vmul.f32 %v1331_v27, %v1328_v25 }
 0x476   : > { %v1340_v36 = vsel %vm1339_vm4, %v1336_v21, %v1338_v59  ;;  %v1341_v57 = vsel %vm1339_vm4, %v1338_v59, %v1336_v21  ;;  %v1288_v21 = vmul.f32 %v1286_v19, %v1283_v4 }
 0x477   : > { %v1346_v17 = vcombine.low %v1340_v36, %v1341_v57  ;;  %v1334_v47 = vadd.f32 %v1333_v9, %v1304_v10 }
 0x478   : > { %v1289_v18 = vadd.f32 %v1288_v21, %v1259_v23 }
 0x479   : > { %v1353_v42 = vpop.permute.xlu1 %1352  ;;  %v1351_v8 = vpop.permute.xlu0 %1350  ;;  %v1348_v26 = vmul.f32 %v1346_v17, %v1343_v28  ;;  %v1961_v17 = vmov 1966171168  }
 0x47a   : > { %v1355_v60 = vsel %vm1354_vm5, %v1351_v8, %v1353_v42  ;;  %v1356_v3 = vsel %vm1354_vm5, %v1353_v42, %v1351_v8  ;;  %v1319_v2 = vadd.f32 %v1318_v32, %v1289_v18  ;;  %v1424_v22 = vunpack.c.l.s4 %v1961_v17 }
 0x47b   : > { %v1361_v37 = vcombine.low %v1355_v60, %v1356_v3 }
 0x47c   : > { %v1349_v52 = vadd.f32 %v1348_v26, %v1319_v2  ;;  %v1425_v23 = vunpack.c.0.s8 %v1424_v22 }
 0x47d   : > { %v1368_v11 = vpop.permute.xlu1 %1367  ;;  %v1366_v16 = vpop.permute.xlu0 %1365  ;;  %v1363_v48 = vmul.f32 %v1361_v37, %v1358_v62 }
 0x47e   : > { %v1370_v41 = vsel %vm1369_vm6, %v1366_v16, %v1368_v11  ;;  %v1371_v59 = vsel %vm1369_vm6, %v1368_v11, %v1366_v16  ;;  %v1428_v25 = vsub.s32 %v1425_v23, %v2206_v39 }
 0x47f   : > { %v1376_v40 = vcombine.low %v1370_v41, %v1371_v59  ;;  %v1364_v11 = vadd.f32 %v1363_v48, %v1334_v47 }
 0x481   : > { %v1383_v61 = vpop.permute.xlu1 %1382  ;;  %v1381_v24 = vpop.permute.xlu0 %1380  ;;  %v1378_v19 = vmul.f32 %v1376_v40, %v1373_v63 }
 0x482   : > { %v1385_v42 = vsel %vm1384_vm7, %v1381_v24, %v1383_v61  ;;  %v1386_v8 = vsel %vm1384_vm7, %v1383_v61, %v1381_v24 }
 0x483   : > { %v1391_v13 = vcombine.low %v1385_v42, %v1386_v8  ;;  %v1379_v34 = vadd.f32 %v1378_v19, %v1349_v52 }
 0x485   : > { %v1398_v4 = vpop.permute.xlu1 %1397  ;;  %v1396_v51 = vpop.permute.xlu0 %1395  ;;  %v1393_v55 = vmul.f32 %v1391_v13, %v1388_v7 }
 0x486   : > { %v1400_v36 = vsel %vm1399_vm8, %v1396_v51, %v1398_v4  ;;  %v1401_v57 = vsel %vm1399_vm8, %v1398_v4, %v1396_v51 }
 0x487   : > { %v1406_v56 = vcombine.low %v1400_v36, %v1401_v57  ;;  %v1394_v58 = vadd.f32 %v1393_v55, %v1364_v11 }
 0x489   : > { %v1408_v16 = vmul.f32 %v1406_v56, %v1403_v33 }
 0x48b   : > { %v1409_v20 = vadd.f32 %v1408_v16, %v1379_v34 }
 0x48d   : > { %v1410_v60 = vadd.f32 %v1409_v20, %v1394_v58 }
 0x48f   : > { %v1611_v3 = vrot.slane %v1410_v60, 10 }
 0x491   : > { %v1415_v41 = vadd.f32 %v1611_v3, %v1410_v60 }
 0x493   : > { %v1612_v59 = vmul.f32 -1.442695, %v1415_v41 }
 0x495   : > { %1770 = vpow2.f32 %v1612_v59 }
 0x49f   : > { %v1771_v21 = vpop.eup %1770 }
 0x4a0   : > { %v1419_v27 = vadd.f32 1.0, %v1771_v21 }
 0x4a2   : > { %1772 = vrcp.f32 %v1419_v27 }
 0x4ac   : > { %v1773_v28 = vpop.eup %1772 }
 0x4ad   : > { %v1429_v31 = vrot.slane %v1773_v28, %v1428_v25 }
 0x4af   : > { %v1430_v32 = vcombine.high %v1429_v31, %v1429_v31  ;;  %v1437_v37 = vrot.slane %v1429_v31, %v1428_v25 }
 0x4b1   : > { %v1444_v40 = vrot.slane %v1430_v32, %v1428_v25  ;;  %v1448_v61 = vrot.slane %v1437_v37, %v2220_v35  ;;  %v1452_v24 = vrot.slane %v1437_v37, %v2224_v38 }
 0x4b3   : > { %v1456_v12 = vrot.slane %v1444_v40, %v2220_v35  ;;  %v1460_v62 = vrot.slane %v1444_v40, %v2224_v38  ;;  %v1465_v63 = vmul.f32 %v1448_v61, %v2234_v45  ;;  %v1466_v42 = vmul.f32 %v1452_v24, %v2237_v46 }
 0x4b4   : > { %v1467_v39 = vmul.f32 %v1448_v61, %v2228_v43  ;;  %v1468_v8 = vmul.f32 %v1452_v24, %v2231_v44  ;;  %v1469_v18 = vmul.f32 %v1448_v61, %v2240_v49  ;;  %v1470_v9 = vmul.f32 %v1452_v24, %v2243_v50 }
 0x4b5   : > { %v1471_v35 = vmul.f32 %v1448_v61, %v2260_v53  ;;  %v1472_v38 = vmul.f32 %v1452_v24, %v2263_v54  ;;  %v1473_v45 = vmul.f32 %v1456_v12, %v2270_v5  ;;  %v1474_v46 = vmul.f32 %v1460_v62, %v2273_v6  ;;  %1481 = vst [vmem:[%s231_s23] sm:$0xff] %v1465_v63 }
 0x4b6   : > { %1482 = vst [vmem:[%s231_s23 + $0x8] sm:$0xff] %v1466_v42  ;;  %v1475_v43 = vmul.f32 %v1456_v12, %v2254_v14  ;;  %v1476_v44 = vmul.f32 %v1460_v62, %v2257_v15  ;;  %v1477_v49 = vmul.f32 %v1456_v12, %v2284_v0  ;;  %v1478_v50 = vmul.f32 %v1460_v62, %v2287_v1 }
 0x4b7   : > { %1483 = vst [vmem:[%s231_s23 + $0x10] sm:$0xff] %v1467_v39  ;;  %1484 = vst [vmem:[%s231_s23 + $0x18] sm:$0xff] %v1468_v8  ;;  %v1479_v53 = vmul.f32 %v1456_v12, %v2298_v29  ;;  %v1480_v14 = vmul.f32 %v1460_v62, %v2301_v30 }
 0x4b8   : > { %1485 = vst [vmem:[%s231_s23 + $0x20] sm:$0xff] %v1469_v18  ;;  %1486 = vst [vmem:[%s231_s23 + $0x28] sm:$0xff] %v1470_v9 }
 0x4b9   : > { %1487 = vst [vmem:[%s231_s23 + $0x30] sm:$0xff] %v1471_v35  ;;  %1488 = vst [vmem:[%s231_s23 + $0x38] sm:$0xff] %v1472_v38 }
 0x4ba   : > { %1489 = vst [vmem:[%s231_s23 + $0x40] sm:$0xff] %v1473_v45  ;;  %1490 = vst [vmem:[%s231_s23 + $0x48] sm:$0xff] %v1474_v46 }
 0x4bb   : > { %1491 = vst [vmem:[%s231_s23 + $0x50] sm:$0xff] %v1475_v43  ;;  %1492 = vst [vmem:[%s231_s23 + $0x58] sm:$0xff] %v1476_v44 }
 0x4bc   : > { %1493 = vst [vmem:[%s231_s23 + $0x60] sm:$0xff] %v1477_v49  ;;  %1494 = vst [vmem:[%s231_s23 + $0x68] sm:$0xff] %v1478_v50 }
 0x4bd   : > { %1495 = vst [vmem:[%s231_s23 + $0x70] sm:$0xff] %v1479_v53  ;;  %1496 = vst [vmem:[%s231_s23 + $0x78] sm:$0xff] %v1480_v14 }
 0x4be   : > { %1845 = shalt.err (!%p1842_p7)
}
 0x4bf   : > { %s1846_s26 = scalar_lea.hbm %s2606_s28, 2048  ;;  %s1850_s14 = scalar_lea.hbm %s2659_s4, 4096 }
 0x4c0   : > { %p1847_p9 = scmp.ne.s32.totalorder %s2606_s28, %s1846_s26  ;;  %p1851_p5 = scmp.lt.u32.totalorder %s2606_s28, %s2659_s4 }
 0x4c1   : > { %p1852_p11 = scmp.lt.u32.totalorder %s1850_s14, %s1846_s26  ;;  %p1854_p4 = scmp.lt.u32.totalorder %s1846_s26, %s2606_s28 }
 0x4c2   : > { %p1848_p2 = pnand %p1847_p9, %p2080_p12 }
 0x4c3   : > { %p1853_p1 = por %p1852_p11, %p1851_p5 }
 0x4c4   : > { %p1849_p0 = pneg %p1848_p2 }
 0x4c5   : > { %p1855_p6 = por %p1854_p4, %p1853_p1 }
 0x4c7   : > { %p1856_p8 = pnand %p1855_p6, %p1849_p0 }
 0x4c9   : > { %1859 = shalt.err (!%p1856_p8)
}
 0x4ca   : > { %s1963_s23 = smov 256  }
 0x4cb   : > { %1658 = dma.vmem_to_hbm [thread:$0]  (%p2080_p12), %s2610_s9, 2048, %s2606_s28, %s1498_s29, %s1963_s23, %s1963_s23, %s1930_s11  }
 0x4cc PF: > { %s1527_s19 = sand.u32 1, %s1890_s15   ;;  %p2674_p10 = scmp.ne.s32.totalorder %s2664_s22, 0 }
 0x4cd   : > { %p2675_p13 = scmp.ge.s32.totalorder %s1902_s18, 2  ;;  %s1528_s13 = scalar_lea.sflag [#allocation4], %s1527_s19 }
 0x4cf   : > { %p1669_p3 = pnand %p2675_p13, %p2674_p10 }
 0x4d1   : > { %1885 = dma.done.wait (!%p1669_p3), %s1528_s13, 2048  }
 0x4d2   : > { %1887 = vsyncadd (!%p1669_p3), %s1528_s13, 4294965248  ;;  %p18_p7 = scmp.ge.s32.totalorder %s2045_s27, 4   ;;  %s2676_s15 = smov %s1894_s16 }
 0x4d3   : > { %s2677_s16 = smov %s1898_s17  ;;  %s2678_s17 = smov %s2076_s24 }
 0x4d4   : > { %s2679_s18 = smov %s2045_s27  ;;  %20 = sbr.rel (!%p18_p7) target bundleno = 6 (0x6), region = 133 }
 0x4db   :  { %1533 = vsyncpa [#allocation3], 1 }
 0x4dc   :  { %1535 = vsyncpa [#allocation3 + $0x1], 1 }
 0x4dd   :  { %1536 = vsyncpa [#allocation6], 1 }
 0x4de   :  { %1537 = vsyncpa [#allocation4], 1 }
 0x4df   :  { %1539 = vsyncpa [#allocation4 + $0x1], 1 }

</bundles_post_ra>
